<compile_context>
chip_gen: v7x
topology: tpu7x:2x2x1
jax: 0.10.0
libtpu: 0.0.40
codegen_flags: <defaults>
</compile_context>

<pallas_src>
import jax
import jax.numpy as jnp
from jax.experimental import pallas as pl
from jax.experimental.pallas import tpu as pltpu


def _round_up(x, m):
    return ((x + m - 1) // m) * m


def _bahdanau_kernel(q_ref, k_ref, wq_ref, bq_ref, wk_ref, bk_ref,
                     wv_ref, bv_ref, ctx_ref, attn_ref):
    # q_ref:  (bb, H)        query block
    # k_ref:  (bb, S, H)     keys block (full S, H -> unpadded)
    # wq_ref/wk_ref: (H, H)  projection weights, (in, out) layout
    # bq_ref/bk_ref: (1, H)
    # wv_ref: (1, H)         score-layer weight row;  bv_ref: (1, 1) in SMEM
    # ctx_ref:  (bb, H)      context output rows
    # attn_ref: (bb, S)      attention-weight output rows
    bb, S, H = k_ref.shape

    keys = k_ref[...]                                       # (bb, S, H)
    keys2d = keys.reshape(bb * S, H)                        # one tall MXU matmul

    # transformed_query / transformed_keys  (nn.Linear: x @ W + b)
    tq = jnp.dot(q_ref[...], wq_ref[...],
                 preferred_element_type=jnp.float32) + bq_ref[...]      # (bb, H)
    tk = jnp.dot(keys2d, wk_ref[...],
                 preferred_element_type=jnp.float32) + bk_ref[...]      # (bb*S, H)

    # tanh runs on the EUP slot (hidden under the keys DMA on v5e/v6e).
    # TODO(synk): on v7x (3.2 TB/s HBM) check whether the single EUP slot
    # becomes the binding unit for small H.
    e = jnp.tanh(tk.reshape(bb, S, H) + tq[:, None, :])                 # (bb, S, H)

    # score_layer: VPU multiply + lane reduce over H -> (bb, S) with S on the
    # lane axis (no hidden per-batch transpose of `e`).
    s = jnp.sum(e * wv_ref[...][None], axis=-1) + bv_ref[0, 0]          # (bb, S)

    # softmax over the sequence (lane) axis
    m = jnp.max(s, axis=-1, keepdims=True)
    p = jnp.exp(s - m)
    denom = jnp.sum(p, axis=-1, keepdims=True)               # (bb, 1)
    inv = pl.reciprocal(denom, approx=True)                  # EUP vrcp (free slot)
    inv = inv * (2.0 - denom * inv)                          # Newton step -> ~f32
    w = p * inv                                              # (bb, S), f32

    # context[b, h] = sum_s w[b, s] * keys[b, s, h]  (VPU mul + sublane reduce;
    # w stays f32, keys promoted to f32 -> matches the f32 reference).
    ctx = jnp.sum(w[:, :, None] * keys.astype(jnp.float32), axis=1)     # (bb, H)

    ctx_ref[...] = ctx.astype(ctx_ref.dtype)
    attn_ref[...] = w.astype(attn_ref.dtype)


def _device_plan():
    """Per-TPU-generation VMEM budget and TensorCore count for grid sharding."""
    try:
        kind = jax.devices()[0].device_kind.lower()
    except Exception:
        kind = ""
    if "v7" in kind:
        # v7x: 64 MiB VMEM per TC, 2 TensorCores share the grid.
        return {"n_cores": 2, "vmem_target": 24 << 20, "vmem_cap": 40 << 20}
    if "v5p" in kind or "v4" in kind:
        # Megacore generations: 2 TCs per chip.
        return {"n_cores": 2, "vmem_target": 48 << 20, "vmem_cap": 64 << 20}
    if "v5" in kind or "v6" in kind:
        # v5e / v6e: single TensorCore, 128 MiB VMEM -> fewer, larger steps.
        return {"n_cores": 1, "vmem_target": 64 << 20, "vmem_cap": 100 << 20}
    # Unknown: stay conservative (safe for v7x's 64 MiB VMEM).
    return {"n_cores": 2, "vmem_target": 24 << 20, "vmem_cap": 40 << 20}


def _plan_blocks(batch, seq, hidden, itemsize, *, n_cores, vmem_target):
    """Pick the batch block size so the *total* live VMEM fits the budget."""
    per_b = (2 * seq * hidden * itemsize           # keys block, double-buffered
             + 4 * seq * hidden * 4                # f32 intermediates (tk, e, products)
             + 2 * hidden * itemsize               # query block, double-buffered
             + 2 * (hidden + seq) * itemsize)      # output blocks
    # Weights counted double-buffered (safe even if the single-buffer request
    # below is ignored) + 1 MiB slack.
    fixed = 4 * hidden * hidden * itemsize + 8 * hidden * itemsize + (1 << 20)

    bb = max(1, (vmem_target - fixed) // per_b)
    bb = int(min(bb, batch))
    if bb < batch:
        # Block-dim rule: second-minor block dim must be a multiple of 8
        # (or equal the full batch dim).
        bb = max(min(8, batch), (bb // 8) * 8)
    if n_cores > 1 and batch >= 16:
        # v7x megacore: the grid is sharded across TensorCores -> prefer a
        # core-multiple number of roughly equal steps (no idle core, no
        # oversized last block).
        n_steps = max(n_cores, _round_up(pl.cdiv(batch, bb), n_cores))
        cand = _round_up(pl.cdiv(batch, n_steps), 8)
        if cand <= bb:
            bb = cand
    vmem_needed = fixed + bb * per_b
    return int(bb), int(vmem_needed)


def bahdanau_attention(query, keys, wq, bq, wk, bk, wv, bv, *, block_b=None):
    """query: (B, H), keys: (B, S, H).

    wq/wk: (H, H) pre-transposed to (in, out); bq/bk: (1, H);
    wv: (1, H) score-layer weight row (native PyTorch layout); bv: (1, 1).
    Returns (context (B, 1, H), attention_weights (B, 1, S)).
    """
    B, H = query.shape
    Bk, S, Hk = keys.shape
    assert Bk == B and Hk == H
    dtype = query.dtype
    itemsize = jnp.dtype(dtype).itemsize

    plan = _device_plan()
    if block_b is None:
        bb, vmem_needed = _plan_blocks(B, S, H, itemsize,
                                       n_cores=plan["n_cores"],
                                       vmem_target=plan["vmem_target"])
    else:
        bb, vmem_needed = int(block_b), plan["vmem_target"]
    vmem_limit = int(min(plan["vmem_cap"], max(plan["vmem_target"], vmem_needed)))

    bq2 = jnp.asarray(bq, dtype).reshape(1, H)
    bk2 = jnp.asarray(bk, dtype).reshape(1, H)
    wv2 = jnp.asarray(wv, dtype).reshape(1, H)
    bv2 = jnp.asarray(bv, dtype).reshape(1, 1)

    def run(weight_mode):
        def wspec(shape):
            # Constant index map -> DMA'd once across the grid.
            if weight_mode is None:
                return pl.BlockSpec(shape, lambda b: (0, 0))
            return pl.BlockSpec(shape, lambda b: (0, 0), pipeline_mode=weight_mode)

        grid_spec = pltpu.PrefetchScalarGridSpec(
            num_scalar_prefetch=0,
            grid=(pl.cdiv(B, bb),),
            in_specs=[
                pl.BlockSpec((bb, H), lambda b: (b, 0)),           # query block
                pl.BlockSpec((bb, S, H), lambda b: (b, 0, 0)),     # keys block (unpadded)
                wspec((H, H)),                                     # Wq
                wspec((1, H)),                                     # bq
                wspec((H, H)),                                     # Wk
                wspec((1, H)),                                     # bk
                wspec((1, H)),                                     # Wv row
                pl.BlockSpec(memory_space=pltpu.MemorySpace.SMEM),  # bv scalar
            ],
            out_specs=[
                pl.BlockSpec((bb, H), lambda b: (b, 0)),           # context rows
                pl.BlockSpec((bb, S), lambda b: (b, 0)),           # attention rows
            ],
        )
        return pl.pallas_call(
            _bahdanau_kernel,
            out_shape=(jax.ShapeDtypeStruct((B, H), dtype),
                       jax.ShapeDtypeStruct((B, S), dtype)),
            grid_spec=grid_spec,
            compiler_params=pltpu.CompilerParams(
                dimension_semantics=("parallel",),
                vmem_limit_bytes=vmem_limit,
            ),
        )(query, keys, wq, bq2, wk, bk2, wv2, bv2)

    try:
        # Single-buffer the constant-index weight/bias inputs to reclaim VMEM
        # (their second pipeline buffer is dead since they are DMA'd once).
        ctx2d, attn2d = run(pl.Buffered(1))
    except Exception:
        # Fallback if this Pallas version rejects buffer_count=1: default
        # double buffering (already covered by the VMEM accounting above).
        ctx2d, attn2d = run(None)

    return ctx2d[:, None, :], attn2d[:, None, :]


def _reference(query, keys, wq, bq, wk, bk, wv_row, bv):
    tq = query[:, None, :] @ wq + bq                      # (B, 1, H)
    tk = keys @ wk + bk                                   # (B, S, H)
    s = jnp.tanh(tq + tk) @ wv_row.T + bv                 # (B, S, 1)
    s = jnp.swapaxes(s, 1, 2)                             # (B, 1, S)
    aw = jax.nn.softmax(s, axis=-1)
    ctx = aw @ keys                                       # (B, 1, H)
    return ctx, aw


if __name__ == "__main__":
    B, S, H = 8, 8, 32
    key = jax.random.PRNGKey(0)
    k_q, k_k, k_wq, k_bq, k_wk, k_bk, k_wv, k_bv = jax.random.split(key, 8)

    query = jax.random.normal(k_q, (B, H), dtype=jnp.float32)
    keys = jax.random.normal(k_k, (B, S, H), dtype=jnp.float32)

    # PyTorch nn.Linear weights: query/key layers pre-transposed to (in, out);
    # score layer kept as its native (out, in) = (1, H) row.
    scale = 1.0 / jnp.sqrt(H)
    wq = jax.random.uniform(k_wq, (H, H), jnp.float32, -scale, scale)
    bq = jax.random.uniform(k_bq, (1, H), jnp.float32, -scale, scale)
    wk = jax.random.uniform(k_wk, (H, H), jnp.float32, -scale, scale)
    bk = jax.random.uniform(k_bk, (1, H), jnp.float32, -scale, scale)
    wv = jax.random.uniform(k_wv, (1, H), jnp.float32, -scale, scale)
    bv = jax.random.uniform(k_bv, (1, 1), jnp.float32, -scale, scale)

    ctx, attn = bahdanau_attention(query, keys, wq, bq, wk, bk, wv, bv)
    jax.block_until_ready((ctx, attn))

    ctx_ref, attn_ref = _reference(query, keys, wq, bq, wk, bk, wv, bv)
    assert ctx.shape == (B, 1, H) and attn.shape == (B, 1, S)
    # Tolerance covers the EUP approximate reciprocal (+ Newton refinement) in
    # the softmax denominator; everything else accumulates in f32.
    assert jnp.allclose(ctx, ctx_ref, atol=1e-4, rtol=1e-4)
    assert jnp.allclose(attn, attn_ref, atol=1e-4, rtol=1e-4)

    print("KERNEL_OK")
</pallas_src>

<mosaic_0001>
module attributes {stable_mosaic.version = 11 : i64} {
  func.func @_bahdanau_kernel(%arg0: i32, %arg1: memref<8x32xf32, #tpu.memory_space<vmem>>, %arg2: memref<8x8x32xf32, #tpu.memory_space<vmem>>, %arg3: memref<32x32xf32, #tpu.memory_space<vmem>>, %arg4: memref<1x32xf32, #tpu.memory_space<vmem>>, %arg5: memref<32x32xf32, #tpu.memory_space<vmem>>, %arg6: memref<1x32xf32, #tpu.memory_space<vmem>>, %arg7: memref<1x32xf32, #tpu.memory_space<vmem>>, %arg8: memref<1x1xf32, #tpu.memory_space<smem>>, %arg9: memref<8x32xf32, #tpu.memory_space<vmem>>, %arg10: memref<8x8xf32, #tpu.memory_space<vmem>>) attributes {dimension_semantics = [#tpu.dimension_semantics<parallel>], iteration_bounds = array<i64: 1>, scalar_prefetch = 0 : i64, scratch_operands = 0 : i64, tpu.core_type = #tpu.core_type<tc>, window_params = [{transform_indices = @transform_0, window_bounds = array<i64: 8, 32>}, {transform_indices = @transform_1, window_bounds = array<i64: 8, 8, 32>}, {pipeline_mode = #tpu.pipeline_mode<synchronous>, transform_indices = @transform_2, window_bounds = array<i64: 32, 32>}, {pipeline_mode = #tpu.pipeline_mode<synchronous>, transform_indices = @transform_3, window_bounds = array<i64: 1, 32>}, {pipeline_mode = #tpu.pipeline_mode<synchronous>, transform_indices = @transform_4, window_bounds = array<i64: 32, 32>}, {pipeline_mode = #tpu.pipeline_mode<synchronous>, transform_indices = @transform_5, window_bounds = array<i64: 1, 32>}, {pipeline_mode = #tpu.pipeline_mode<synchronous>, transform_indices = @transform_6, window_bounds = array<i64: 1, 32>}, {transform_indices = @transform_7, window_bounds = array<i64: 1, 1>}, {transform_indices = @transform_8, window_bounds = array<i64: 8, 32>}, {transform_indices = @transform_9, window_bounds = array<i64: 8, 8>}]} {
    %c0 = arith.constant 0 : index
    %c0_0 = arith.constant 0 : index
    %c0_1 = arith.constant 0 : index
    %0 = vector.load %arg2[%c0, %c0_0, %c0_1] : memref<8x8x32xf32, #tpu.memory_space<vmem>>, vector<8x8x32xf32>
    %1 = vector.shape_cast %0 : vector<8x8x32xf32> to vector<64x32xf32>
    %c0_2 = arith.constant 0 : index
    %c0_3 = arith.constant 0 : index
    %2 = vector.load %arg1[%c0_2, %c0_3] : memref<8x32xf32, #tpu.memory_space<vmem>>, vector<8x32xf32>
    %c0_4 = arith.constant 0 : index
    %c0_5 = arith.constant 0 : index
    %3 = vector.load %arg3[%c0_4, %c0_5] : memref<32x32xf32, #tpu.memory_space<vmem>>, vector<32x32xf32>
    %cst = arith.constant dense<0.000000e+00> : vector<8x32xf32>
    %4 = tpu.matmul %2, %3, %cst {dimension_numbers = #tpu.dot_dimension_numbers<[1], [0], [0], [1], [0, 0, 1, 1], [], []>} : vector<8x32xf32>, vector<32x32xf32>, vector<8x32xf32> -> vector<8x32xf32>
    %c0_6 = arith.constant 0 : index
    %c0_7 = arith.constant 0 : index
    %5 = vector.load %arg4[%c0_6, %c0_7] : memref<1x32xf32, #tpu.memory_space<vmem>>, vector<1x32xf32>
    %6 = vector.broadcast %5 : vector<1x32xf32> to vector<8x32xf32>
    %7 = arith.addf %4, %6 : vector<8x32xf32>
    %c0_8 = arith.constant 0 : index
    %c0_9 = arith.constant 0 : index
    %8 = vector.load %arg5[%c0_8, %c0_9] : memref<32x32xf32, #tpu.memory_space<vmem>>, vector<32x32xf32>
    %cst_10 = arith.constant dense<0.000000e+00> : vector<64x32xf32>
    %9 = tpu.matmul %1, %8, %cst_10 {dimension_numbers = #tpu.dot_dimension_numbers<[1], [0], [0], [1], [0, 0, 1, 1], [], []>} : vector<64x32xf32>, vector<32x32xf32>, vector<64x32xf32> -> vector<64x32xf32>
    %c0_11 = arith.constant 0 : index
    %c0_12 = arith.constant 0 : index
    %10 = vector.load %arg6[%c0_11, %c0_12] : memref<1x32xf32, #tpu.memory_space<vmem>>, vector<1x32xf32>
    %11 = vector.broadcast %10 : vector<1x32xf32> to vector<64x32xf32>
    %12 = arith.addf %9, %11 : vector<64x32xf32>
    %13 = vector.shape_cast %12 : vector<64x32xf32> to vector<8x8x32xf32>
    %14 = vector.shape_cast %7 : vector<8x32xf32> to vector<8x1x32xf32>
    %15 = vector.broadcast %14 : vector<8x1x32xf32> to vector<8x8x32xf32>
    %16 = arith.addf %13, %15 : vector<8x8x32xf32>
    %17 = math.tanh %16 : vector<8x8x32xf32>
    %c0_13 = arith.constant 0 : index
    %c0_14 = arith.constant 0 : index
    %18 = vector.load %arg7[%c0_13, %c0_14] : memref<1x32xf32, #tpu.memory_space<vmem>>, vector<1x32xf32>
    %19 = vector.shape_cast %18 : vector<1x32xf32> to vector<1x1x32xf32>
    %20 = vector.broadcast %19 : vector<1x1x32xf32> to vector<8x8x32xf32>
    %21 = arith.mulf %17, %20 : vector<8x8x32xf32>
    %cst_15 = arith.constant dense<0.000000e+00> : vector<8x8xf32>
    %22 = vector.multi_reduction <add>, %21, %cst_15 [2] : vector<8x8x32xf32> to vector<8x8xf32>
    %c0_16 = arith.constant 0 : index
    %c0_17 = arith.constant 0 : index
    %23 = memref.load %arg8[%c0_16, %c0_17] : memref<1x1xf32, #tpu.memory_space<smem>>
    %24 = vector.broadcast %23 : f32 to vector<8x8xf32>
    %25 = arith.addf %22, %24 : vector<8x8xf32>
    %cst_18 = arith.constant dense<0xFF800000> : vector<8xf32>
    %26 = vector.multi_reduction <maximumf>, %25, %cst_18 [1] : vector<8x8xf32> to vector<8xf32>
    %27 = vector.shape_cast %26 : vector<8xf32> to vector<8x1xf32>
    %28 = vector.broadcast %27 : vector<8x1xf32> to vector<8x8xf32>
    %29 = arith.subf %25, %28 : vector<8x8xf32>
    %30 = math.exp %29 : vector<8x8xf32>
    %cst_19 = arith.constant dense<0.000000e+00> : vector<8xf32>
    %31 = vector.multi_reduction <add>, %30, %cst_19 [1] : vector<8x8xf32> to vector<8xf32>
    %32 = vector.shape_cast %31 : vector<8xf32> to vector<8x1xf32>
    %33 = tpu.reciprocal %32 {approx = true} : vector<8x1xf32> -> vector<8x1xf32>
    %34 = arith.mulf %32, %33 : vector<8x1xf32>
    %cst_20 = arith.constant 2.000000e+00 : f32
    %35 = vector.broadcast %cst_20 : f32 to vector<8x1xf32>
    %36 = arith.subf %35, %34 : vector<8x1xf32>
    %37 = arith.mulf %33, %36 : vector<8x1xf32>
    %38 = vector.broadcast %37 : vector<8x1xf32> to vector<8x8xf32>
    %39 = arith.mulf %30, %38 : vector<8x8xf32>
    %40 = vector.shape_cast %39 : vector<8x8xf32> to vector<8x8x1xf32>
    %41 = vector.broadcast %40 : vector<8x8x1xf32> to vector<8x8x32xf32>
    %42 = arith.mulf %41, %0 : vector<8x8x32xf32>
    %cst_21 = arith.constant dense<0.000000e+00> : vector<8x32xf32>
    %43 = vector.multi_reduction <add>, %42, %cst_21 [1] : vector<8x8x32xf32> to vector<8x32xf32>
    %c0_22 = arith.constant 0 : index
    %c0_23 = arith.constant 0 : index
    %44 = vector.load %arg9[%c0_22, %c0_23] : memref<8x32xf32, #tpu.memory_space<vmem>>, vector<8x32xf32>
    tpu.vector_store %arg9[%c0_22, %c0_23], %43 {strides = array<i32>} : memref<8x32xf32, #tpu.memory_space<vmem>>, vector<8x32xf32>,
    %c0_24 = arith.constant 0 : index
    %c0_25 = arith.constant 0 : index
    %45 = vector.load %arg10[%c0_24, %c0_25] : memref<8x8xf32, #tpu.memory_space<vmem>>, vector<8x8xf32>
    tpu.vector_store %arg10[%c0_24, %c0_25], %39 {strides = array<i32>} : memref<8x8xf32, #tpu.memory_space<vmem>>, vector<8x8xf32>,
    return
  }
  func.func @transform_0(%arg0: i32) -> (i32, i32) {
    %c0_i32 = arith.constant 0 : i32
    %c0_i32_0 = arith.constant 0 : i32
    return %arg0, %c0_i32 : i32, i32
  }
  func.func @transform_1(%arg0: i32) -> (i32, i32, i32) {
    %c0_i32 = arith.constant 0 : i32
    %c0_i32_0 = arith.constant 0 : i32
    %c0_i32_1 = arith.constant 0 : i32
    return %arg0, %c0_i32, %c0_i32_0 : i32, i32, i32
  }
  func.func @transform_2(%arg0: i32) -> (i32, i32) {
    %c0_i32 = arith.constant 0 : i32
    %c0_i32_0 = arith.constant 0 : i32
    %c0_i32_1 = arith.constant 0 : i32
    return %c0_i32, %c0_i32_0 : i32, i32
  }
  func.func @transform_3(%arg0: i32) -> (i32, i32) {
    %c0_i32 = arith.constant 0 : i32
    %c0_i32_0 = arith.constant 0 : i32
    %c0_i32_1 = arith.constant 0 : i32
    return %c0_i32, %c0_i32_0 : i32, i32
  }
  func.func @transform_4(%arg0: i32) -> (i32, i32) {
    %c0_i32 = arith.constant 0 : i32
    %c0_i32_0 = arith.constant 0 : i32
    %c0_i32_1 = arith.constant 0 : i32
    return %c0_i32, %c0_i32_0 : i32, i32
  }
  func.func @transform_5(%arg0: i32) -> (i32, i32) {
    %c0_i32 = arith.constant 0 : i32
    %c0_i32_0 = arith.constant 0 : i32
    %c0_i32_1 = arith.constant 0 : i32
    return %c0_i32, %c0_i32_0 : i32, i32
  }
  func.func @transform_6(%arg0: i32) -> (i32, i32) {
    %c0_i32 = arith.constant 0 : i32
    %c0_i32_0 = arith.constant 0 : i32
    %c0_i32_1 = arith.constant 0 : i32
    return %c0_i32, %c0_i32_0 : i32, i32
  }
  func.func @transform_7(%arg0: i32) -> (i32, i32) {
    %c0_i32 = arith.constant 0 : i32
    %c0_i32_0 = arith.constant 0 : i32
    %c0_i32_1 = arith.constant 0 : i32
    return %c0_i32, %c0_i32_0 : i32, i32
  }
  func.func @transform_8(%arg0: i32) -> (i32, i32) {
    %c0_i32 = arith.constant 0 : i32
    %c0_i32_0 = arith.constant 0 : i32
    return %arg0, %c0_i32 : i32, i32
  }
  func.func @transform_9(%arg0: i32) -> (i32, i32) {
    %c0_i32 = arith.constant 0 : i32
    %c0_i32_0 = arith.constant 0 : i32
    return %arg0, %c0_i32 : i32, i32
  }
}

module attributes {stable_mosaic.version = 11 : i64} {
  func.func @_bahdanau_kernel(%arg0: i32, %arg1: memref<8x32xf32, #tpu.memory_space<vmem>>, %arg2: memref<8x8x32xf32, #tpu.memory_space<vmem>>, %arg3: memref<32x32xf32, #tpu.memory_space<vmem>>, %arg4: memref<1x32xf32, #tpu.memory_space<vmem>>, %arg5: memref<32x32xf32, #tpu.memory_space<vmem>>, %arg6: memref<1x32xf32, #tpu.memory_space<vmem>>, %arg7: memref<1x32xf32, #tpu.memory_space<vmem>>, %arg8: memref<1x1xf32, #tpu.memory_space<smem>>, %arg9: memref<8x32xf32, #tpu.memory_space<vmem>>, %arg10: memref<8x8xf32, #tpu.memory_space<vmem>>) attributes {dimension_semantics = [#tpu.dimension_semantics<parallel>], iteration_bounds = array<i64: 1>, scalar_prefetch = 0 : i64, scratch_operands = 0 : i64, tpu.core_type = #tpu.core_type<tc>, window_params = [{transform_indices = @transform_0, window_bounds = array<i64: 8, 32>}, {transform_indices = @transform_1, window_bounds = array<i64: 8, 8, 32>}, {pipeline_mode = #tpu.pipeline_mode<synchronous>, transform_indices = @transform_2, window_bounds = array<i64: 32, 32>}, {pipeline_mode = #tpu.pipeline_mode<synchronous>, transform_indices = @transform_3, window_bounds = array<i64: 1, 32>}, {pipeline_mode = #tpu.pipeline_mode<synchronous>, transform_indices = @transform_4, window_bounds = array<i64: 32, 32>}, {pipeline_mode = #tpu.pipeline_mode<synchronous>, transform_indices = @transform_5, window_bounds = array<i64: 1, 32>}, {pipeline_mode = #tpu.pipeline_mode<synchronous>, transform_indices = @transform_6, window_bounds = array<i64: 1, 32>}, {transform_indices = @transform_7, window_bounds = array<i64: 1, 1>}, {transform_indices = @transform_8, window_bounds = array<i64: 8, 32>}, {transform_indices = @transform_9, window_bounds = array<i64: 8, 8>}]} {
    %c0 = arith.constant 0 : index
    %c0_0 = arith.constant 0 : index
    %c0_1 = arith.constant 0 : index
    %0 = vector.load %arg2[%c0, %c0_0, %c0_1] : memref<8x8x32xf32, #tpu.memory_space<vmem>>, vector<8x8x32xf32>
    %1 = vector.shape_cast %0 : vector<8x8x32xf32> to vector<64x32xf32>
    %c0_2 = arith.constant 0 : index
    %c0_3 = arith.constant 0 : index
    %2 = vector.load %arg1[%c0_2, %c0_3] : memref<8x32xf32, #tpu.memory_space<vmem>>, vector<8x32xf32>
    %c0_4 = arith.constant 0 : index
    %c0_5 = arith.constant 0 : index
    %3 = vector.load %arg3[%c0_4, %c0_5] : memref<32x32xf32, #tpu.memory_space<vmem>>, vector<32x32xf32>
    %cst = arith.constant dense<0.000000e+00> : vector<8x32xf32>
    %4 = tpu.matmul %2, %3, %cst {dimension_numbers = #tpu.dot_dimension_numbers<[1], [0], [0], [1], [0, 0, 1, 1], [], []>} : vector<8x32xf32>, vector<32x32xf32>, vector<8x32xf32> -> vector<8x32xf32>
    %c0_6 = arith.constant 0 : index
    %c0_7 = arith.constant 0 : index
    %5 = vector.load %arg4[%c0_6, %c0_7] : memref<1x32xf32, #tpu.memory_space<vmem>>, vector<1x32xf32>
    %6 = vector.broadcast %5 : vector<1x32xf32> to vector<8x32xf32>
    %7 = arith.addf %4, %6 : vector<8x32xf32>
    %c0_8 = arith.constant 0 : index
    %c0_9 = arith.constant 0 : index
    %8 = vector.load %arg5[%c0_8, %c0_9] : memref<32x32xf32, #tpu.memory_space<vmem>>, vector<32x32xf32>
    %cst_10 = arith.constant dense<0.000000e+00> : vector<64x32xf32>
    %9 = tpu.matmul %1, %8, %cst_10 {dimension_numbers = #tpu.dot_dimension_numbers<[1], [0], [0], [1], [0, 0, 1, 1], [], []>} : vector<64x32xf32>, vector<32x32xf32>, vector<64x32xf32> -> vector<64x32xf32>
    %c0_11 = arith.constant 0 : index
    %c0_12 = arith.constant 0 : index
    %10 = vector.load %arg6[%c0_11, %c0_12] : memref<1x32xf32, #tpu.memory_space<vmem>>, vector<1x32xf32>
    %11 = vector.broadcast %10 : vector<1x32xf32> to vector<64x32xf32>
    %12 = arith.addf %9, %11 : vector<64x32xf32>
    %13 = vector.shape_cast %12 : vector<64x32xf32> to vector<8x8x32xf32>
    %14 = vector.shape_cast %7 : vector<8x32xf32> to vector<8x1x32xf32>
    %15 = vector.broadcast %14 : vector<8x1x32xf32> to vector<8x8x32xf32>
    %16 = arith.addf %13, %15 : vector<8x8x32xf32>
    %17 = math.tanh %16 : vector<8x8x32xf32>
    %c0_13 = arith.constant 0 : index
    %c0_14 = arith.constant 0 : index
    %18 = vector.load %arg7[%c0_13, %c0_14] : memref<1x32xf32, #tpu.memory_space<vmem>>, vector<1x32xf32>
    %19 = vector.shape_cast %18 : vector<1x32xf32> to vector<1x1x32xf32>
    %20 = vector.broadcast %19 : vector<1x1x32xf32> to vector<8x8x32xf32>
    %21 = arith.mulf %17, %20 : vector<8x8x32xf32>
    %cst_15 = arith.constant dense<0.000000e+00> : vector<8x8xf32>
    %22 = vector.multi_reduction <add>, %21, %cst_15 [2] : vector<8x8x32xf32> to vector<8x8xf32>
    %c0_16 = arith.constant 0 : index
    %c0_17 = arith.constant 0 : index
    %23 = memref.load %arg8[%c0_16, %c0_17] : memref<1x1xf32, #tpu.memory_space<smem>>
    %24 = vector.broadcast %23 : f32 to vector<8x8xf32>
    %25 = arith.addf %22, %24 : vector<8x8xf32>
    %cst_18 = arith.constant dense<0xFF800000> : vector<8xf32>
    %26 = vector.multi_reduction <maximumf>, %25, %cst_18 [1] : vector<8x8xf32> to vector<8xf32>
    %27 = vector.shape_cast %26 : vector<8xf32> to vector<8x1xf32>
    %28 = vector.broadcast %27 : vector<8x1xf32> to vector<8x8xf32>
    %29 = arith.subf %25, %28 : vector<8x8xf32>
    %30 = math.exp %29 : vector<8x8xf32>
    %cst_19 = arith.constant dense<0.000000e+00> : vector<8xf32>
    %31 = vector.multi_reduction <add>, %30, %cst_19 [1] : vector<8x8xf32> to vector<8xf32>
    %32 = vector.shape_cast %31 : vector<8xf32> to vector<8x1xf32>
    %33 = tpu.reciprocal %32 {approx = true} : vector<8x1xf32> -> vector<8x1xf32>
    %34 = arith.mulf %32, %33 : vector<8x1xf32>
    %cst_20 = arith.constant 2.000000e+00 : f32
    %35 = vector.broadcast %cst_20 : f32 to vector<8x1xf32>
    %36 = arith.subf %35, %34 : vector<8x1xf32>
    %37 = arith.mulf %33, %36 : vector<8x1xf32>
    %38 = vector.broadcast %37 : vector<8x1xf32> to vector<8x8xf32>
    %39 = arith.mulf %30, %38 : vector<8x8xf32>
    %40 = vector.shape_cast %39 : vector<8x8xf32> to vector<8x8x1xf32>
    %41 = vector.broadcast %40 : vector<8x8x1xf32> to vector<8x8x32xf32>
    %42 = arith.mulf %41, %0 : vector<8x8x32xf32>
    %cst_21 = arith.constant dense<0.000000e+00> : vector<8x32xf32>
    %43 = vector.multi_reduction <add>, %42, %cst_21 [1] : vector<8x8x32xf32> to vector<8x32xf32>
    %c0_22 = arith.constant 0 : index
    %c0_23 = arith.constant 0 : index
    %44 = vector.load %arg9[%c0_22, %c0_23] : memref<8x32xf32, #tpu.memory_space<vmem>>, vector<8x32xf32>
    tpu.vector_store %arg9[%c0_22, %c0_23], %43 {strides = array<i32>} : memref<8x32xf32, #tpu.memory_space<vmem>>, vector<8x32xf32>,
    %c0_24 = arith.constant 0 : index
    %c0_25 = arith.constant 0 : index
    %45 = vector.load %arg10[%c0_24, %c0_25] : memref<8x8xf32, #tpu.memory_space<vmem>>, vector<8x8xf32>
    tpu.vector_store %arg10[%c0_24, %c0_25], %39 {strides = array<i32>} : memref<8x8xf32, #tpu.memory_space<vmem>>, vector<8x8xf32>,
    return
  }
  func.func @transform_0(%arg0: i32) -> (i32, i32) {
    %c0_i32 = arith.constant 0 : i32
    %c0_i32_0 = arith.constant 0 : i32
    return %arg0, %c0_i32 : i32, i32
  }
  func.func @transform_1(%arg0: i32) -> (i32, i32, i32) {
    %c0_i32 = arith.constant 0 : i32
    %c0_i32_0 = arith.constant 0 : i32
    %c0_i32_1 = arith.constant 0 : i32
    return %arg0, %c0_i32, %c0_i32_0 : i32, i32, i32
  }
  func.func @transform_2(%arg0: i32) -> (i32, i32) {
    %c0_i32 = arith.constant 0 : i32
    %c0_i32_0 = arith.constant 0 : i32
    %c0_i32_1 = arith.constant 0 : i32
    return %c0_i32, %c0_i32_0 : i32, i32
  }
  func.func @transform_3(%arg0: i32) -> (i32, i32) {
    %c0_i32 = arith.constant 0 : i32
    %c0_i32_0 = arith.constant 0 : i32
    %c0_i32_1 = arith.constant 0 : i32
    return %c0_i32, %c0_i32_0 : i32, i32
  }
  func.func @transform_4(%arg0: i32) -> (i32, i32) {
    %c0_i32 = arith.constant 0 : i32
    %c0_i32_0 = arith.constant 0 : i32
    %c0_i32_1 = arith.constant 0 : i32
    return %c0_i32, %c0_i32_0 : i32, i32
  }
  func.func @transform_5(%arg0: i32) -> (i32, i32) {
    %c0_i32 = arith.constant 0 : i32
    %c0_i32_0 = arith.constant 0 : i32
    %c0_i32_1 = arith.constant 0 : i32
    return %c0_i32, %c0_i32_0 : i32, i32
  }
  func.func @transform_6(%arg0: i32) -> (i32, i32) {
    %c0_i32 = arith.constant 0 : i32
    %c0_i32_0 = arith.constant 0 : i32
    %c0_i32_1 = arith.constant 0 : i32
    return %c0_i32, %c0_i32_0 : i32, i32
  }
  func.func @transform_7(%arg0: i32) -> (i32, i32) {
    %c0_i32 = arith.constant 0 : i32
    %c0_i32_0 = arith.constant 0 : i32
    %c0_i32_1 = arith.constant 0 : i32
    return %c0_i32, %c0_i32_0 : i32, i32
  }
  func.func @transform_8(%arg0: i32) -> (i32, i32) {
    %c0_i32 = arith.constant 0 : i32
    %c0_i32_0 = arith.constant 0 : i32
    return %arg0, %c0_i32 : i32, i32
  }
  func.func @transform_9(%arg0: i32) -> (i32, i32) {
    %c0_i32 = arith.constant 0 : i32
    %c0_i32_0 = arith.constant 0 : i32
    return %arg0, %c0_i32 : i32, i32
  }
}

</mosaic_0001>

<bundles_post_ra>
// kernel: tpu_custom_call.1
= control target key start
LH: loop header
LB: loop body
LE: loop exit
PB: predicated region body
PF: predicated region fallthrough
CT: control target
= control target key end

     0   :  { %16 = vsyncpa [#allocation4], 0  ;;  %s1525_s0 = inlined_call_operand.hbm [shape: f32[8,32], index: 0, kind: input, shape index: {}]   ;;  %s1526_s1 = inlined_call_operand.hbm [shape: f32[8,8,32], index: 1, kind: input, shape index: {}]   ;;  %s1527_s2 = inlined_call_operand.hbm [shape: f32[32,32], index: 2, kind: input, shape index: {}]   ;;  %s1528_s3 = inlined_call_operand.vmem [shape: f32[1,32], index: 3, kind: input, shape index: {}]   ;;  %s1529_s4 = inlined_call_operand.hbm [shape: f32[32,32], index: 4, kind: input, shape index: {}]   ;;  %s1530_s5 = inlined_call_operand.vmem [shape: f32[1,32], index: 5, kind: input, shape index: {}]   ;;  %s1531_s6 = inlined_call_operand.vmem [shape: f32[1,32], index: 6, kind: input, shape index: {}]   ;;  %s1532_s7 = inlined_call_operand.<no memory space> [shape: f32[1,1], index: 7, kind: input, shape index: {}]   ;;  %s1533_s8 = inlined_call_operand.hbm [shape: f32[8,32], index: 8, kind: output, shape index: {0}]   ;;  %s1534_s9 = inlined_call_operand.hbm [shape: f32[8,8], index: 9, kind: output, shape index: {1}]  }
   0x1   :  { %17 = vsyncpa [#allocation7], 0 }
   0x2   :  { %18 = vsyncpa [#allocation10], 0 }
   0x3   :  { %19 = vsyncpa [#allocation5], 0 }
   0x4   :  { %20 = vsyncpa [#allocation13], 0  ;;  %s1192_s30 = smov [#allocation6]   ;;  %s1050_s13 = scalar_lea.hbm %s1526_s1, 1024 }
   0x5   :  { %s36_s10 = sshll.u32 %s1192_s30, 4  ;;  %p1051_p0 = scmp.ne.s32.totalorder %s1526_s1, %s1050_s13  ;;  %s37_s10 = int_to_ptr.vmem [resolvable:$true] %s36_s10 }
   0x6   :  { %p1054_p1 = scmp.lt.u32.totalorder %s1050_s13, %s1526_s1 }
   0x8   :  { %p1056_p2 = pnand %p1054_p1, %p1051_p0 }
   0xa   :  { %1059 = shalt.err (!%p1056_p2)
}
   0xb   :  { %s1060_s18 = scalar_lea.vmem %s37_s10, 1024  ;;  %p1065_p4 = scmp.lt.s32.totalorder %s37_s10, %s37_s10 }
   0xc   :  { %p1061_p3 = scmp.ne.s32.totalorder %s37_s10, %s1060_s18  ;;  %p1066_p5 = scmp.lt.s32.totalorder %s1060_s18, %s1060_s18 }
   0xe   :  { %p1067_p6 = por %p1066_p5, %p1065_p4 }
  0x10   :  { %p1068_p7 = pnand %p1067_p6, %p1061_p3 }
  0x12   :  { %1071 = shalt.err (!%p1068_p7)
}
  0x13   :  { %s1193_s19 = smov 128   ;;  %s1194_s20 = smov 8  }
  0x14   :  { %42 = dma.hbm_to_vmem [thread:$0]  %s1526_s1, 1024, %s37_s10, [#allocation7], %s1193_s19, %s1193_s19, %s1194_s20  }
  0x15   :  { %s1195_s23 = smov [#allocation3]   ;;  %s1196_s25 = smov [#allocation8]  }
  0x16   :  { %s27_s24 = sshll.u32 %s1195_s23, 4  ;;  %s48_s26 = sshll.u32 %s1196_s25, 4  ;;  %s28_s24 = int_to_ptr.vmem [resolvable:$true] %s27_s24  ;;  %s49_s26 = int_to_ptr.vmem [resolvable:$true] %s48_s26 }
  0x17   :  { %s1072_s29 = scalar_lea.hbm %s1525_s0, 128 }
  0x18   :  { %p1073_p8 = scmp.ne.s32.totalorder %s1525_s0, %s1072_s29  ;;  %p1076_p9 = scmp.lt.u32.totalorder %s1072_s29, %s1525_s0 }
  0x1a   :  { %p1078_p10 = pnand %p1076_p9, %p1073_p8 }
  0x1c   :  { %1081 = shalt.err (!%p1078_p10)
}
  0x1d   :  { %s1082_s1 = scalar_lea.vmem %s28_s24, 128  ;;  %p1087_p12 = scmp.lt.s32.totalorder %s28_s24, %s28_s24 }
  0x1e   :  { %p1083_p11 = scmp.ne.s32.totalorder %s28_s24, %s1082_s1  ;;  %p1088_p13 = scmp.lt.s32.totalorder %s1082_s1, %s1082_s1 }
  0x20   :  { %p1089_p0 = por %p1088_p13, %p1087_p12 }
  0x22   :  { %p1090_p1 = pnand %p1089_p0, %p1083_p11 }
  0x24   :  { %1093 = shalt.err (!%p1090_p1)
}
  0x25   :  { %30 = dma.hbm_to_vmem [thread:$0]  %s1525_s0, 128, %s28_s24, [#allocation4]  }
  0x26   :  { %s1094_s17 = scalar_lea.hbm %s1527_s2, 512 }
  0x27   :  { %p1095_p2 = scmp.ne.s32.totalorder %s1527_s2, %s1094_s17  ;;  %p1098_p3 = scmp.lt.u32.totalorder %s1094_s17, %s1527_s2 }
  0x29   :  { %p1100_p4 = pnand %p1098_p3, %p1095_p2 }
  0x2b   :  { %1103 = shalt.err (!%p1100_p4)
}
  0x2c   :  { %s1104_s25 = scalar_lea.vmem %s49_s26, 512  ;;  %p1109_p6 = scmp.lt.s32.totalorder %s49_s26, %s49_s26 }
  0x2d   :  { %p1105_p5 = scmp.ne.s32.totalorder %s49_s26, %s1104_s25  ;;  %p1110_p7 = scmp.lt.s32.totalorder %s1104_s25, %s1104_s25 }
  0x2f   :  { %p1111_p8 = por %p1110_p7, %p1109_p6 }
  0x31   :  { %p1112_p9 = pnand %p1111_p8, %p1105_p5 }
  0x33   :  { %1115 = shalt.err (!%p1112_p9)
}
  0x34   :  { %54 = dma.hbm_to_vmem [thread:$0]  %s1527_s2, 512, %s49_s26, [#allocation7], %s1193_s19, %s1193_s19, %s1194_s20  }
  0x35   :  { %s1197_s27 = smov [#allocation9]   ;;  %s1116_s11 = scalar_lea.hbm %s1529_s4, 512 }
  0x36   :  { %s62_s28 = sshll.u32 %s1197_s27, 4  ;;  %p1117_p10 = scmp.ne.s32.totalorder %s1529_s4, %s1116_s11  ;;  %s63_s28 = int_to_ptr.vmem [resolvable:$true] %s62_s28 }
  0x37   :  { %p1120_p11 = scmp.lt.u32.totalorder %s1116_s11, %s1529_s4 }
  0x39   :  { %p1122_p12 = pnand %p1120_p11, %p1117_p10 }
  0x3b   :  { %1125 = shalt.err (!%p1122_p12)
}
  0x3c   :  { %s1126_s14 = scalar_lea.vmem %s63_s28, 512  ;;  %p1131_p0 = scmp.lt.s32.totalorder %s63_s28, %s63_s28 }
  0x3d   :  { %p1127_p13 = scmp.ne.s32.totalorder %s63_s28, %s1126_s14  ;;  %p1132_p1 = scmp.lt.s32.totalorder %s1126_s14, %s1126_s14 }
  0x3f   :  { %p1133_p2 = por %p1132_p1, %p1131_p0 }
  0x41   :  { %p1134_p3 = pnand %p1133_p2, %p1127_p13 }
  0x43   :  { %1137 = shalt.err (!%p1134_p3)
}
  0x44   :  { %68 = dma.hbm_to_vmem [thread:$0]  %s1529_s4, 512, %s63_s28, [#allocation10], %s1193_s19, %s1193_s19, %s1194_s20  }
  0x45   :  { %1182 = dma.done.wait [#allocation4], 128  }
  0x46   :  { %1183 = vsyncadd [#allocation4], 4294967168 }
  0x47   :  { %1184 = dma.done.wait [#allocation7], 1536  }
  0x48   :  { %1185 = vsyncadd [#allocation7], 4294965760 }
  0x49   :  { %1186 = dma.done.wait [#allocation10], 512  }
  0x4a   :  { %1187 = vsyncadd [#allocation10], 4294966784  ;;  %v1198_v0 = vmov 0.0|0.0   ;;  %vm1199_vm0 = vmmov 0   ;;  %v1200_v1 = vmov 0.0   ;;  %v96_v2 = vld [vmem:[#allocation8] sm:$0xff]  ;;  %v326_v25 = vlaneseq }
  0x4b   :  { %983 = vmatprep.subr.bf16.mxu0 %v1198_v0  ;;  %960 = vmatprep.mubr.msk.f32.mxu0 %vm1199_vm0, %v1200_v1  ;;  %v97_v3 = vld [vmem:[#allocation8 + $0x8] sm:$0xff]  ;;  %v181_v4 = vld [vmem:[#allocation9] sm:$0xff]  ;;  %v98_v7 = vld [vmem:[#allocation8 + $0x10] sm:$0xff]  ;;  %vm107_vm1 = vcmask 261120   ;;  %v1201_v23 = vmov 1966171168  }
  0x4c   :  { %v984_v5 = vpack.c.bf16 %v97_v3, %v96_v2  ;;  %v182_v6 = vld [vmem:[#allocation9 + $0x8] sm:$0xff]  ;;  %v99_v8 = vld [vmem:[#allocation8 + $0x18] sm:$0xff]  ;;  %v183_v10 = vld [vmem:[#allocation9 + $0x10] sm:$0xff]  ;;  %v324_v24 = vunpack.c.l.s4 %v1201_v23  ;;  %v1346_v27 = vshrl.u32 %v326_v25, 7  ;;  %vm518_vm2 = vcmask 1041409  }
  0x4d   :  { %v989_v9 = vpack.c.bf16 %v182_v6, %v181_v4  ;;  %v184_v11 = vld [vmem:[#allocation9 + $0x18] sm:$0xff]  ;;  %v987_v12 = vpack.c.bf16 %v99_v8, %v98_v7  ;;  %v1312_v14 = vld [vmem:[#allocation6 + $0x10] sm:$0xff]  ;;  %v1316_v16 = vld [vmem:[#allocation6] sm:$0xff]  ;;  %vm520_vm3 = vcmask 1042434   ;;  %vm522_vm4 = vcmask 1043459  }
  0x4e   :  { %985 = vmatpush3.bf16.msra.mxu0 %v984_v5  ;;  %v993_v13 = vpack.c.bf16 %v184_v11, %v183_v10  ;;  %974 = vmatprep.mubr.msk.f32.mxu1 %vm107_vm1, %v1312_v14  ;;  %v95_v15 = vld [vmem:[#allocation3] sm:$0xff]  ;;  %v1321_v18 = vld [vmem:[#allocation6 + $0x20] sm:$0xff]  ;;  %v1329_v19 = vld [vmem:[#allocation6 + $0x28] sm:$0xff]  ;;  %v325_v26 = vunpack.c.0.s8 %v324_v24  ;;  %v1356_v38 = vsub.s32 0, %v1346_v27  ;;  %vm524_vm5 = vcmask 1044484  }
  0x4f   :  { %997 = vmatprep.subr.bf16.mxu1 %v989_v9  ;;  %986 = vmatprep.subr.bf16.mxu0 %v1198_v0  ;;  %v1318_v17 = vld [vmem:[#allocation6 + $0x18] sm:$0xff]  ;;  %v1331_v20 = vld [vmem:[#allocation6 + $0x30] sm:$0xff]  ;;  %v1333_v21 = vld [vmem:[#allocation6 + $0x8] sm:$0xff]  ;;  %vm526_vm6 = vcmask 1045509   ;;  %vm528_vm7 = vcmask 1046534   ;;  %vm530_vm8 = vcmask 1047559  }
  0x50   :  { %999 = vmatpush3.bf16.msra.mxu1 %v989_v9  ;;  %v1339_v22 = vld [vmem:[#allocation6 + $0x38] sm:$0xff]  ;;  %v328_v29 = vsub.s32 %v325_v26, %v1346_v27  ;;  %vm533_vm9 = vcmask 64512  }
  0x51   :  { %998 = vmatprep.subr.bf16.mxu1 %v993_v13  ;;  %v923_v28 = vld [vmem:[%s1528_s3] ss:$0 sm:$0xff] }
  0x52   :  { %988 = vmatpush3.bf16.msra.mxu0 %v987_v12  ;;  %v925_v36 = vld [vmem:[%s1530_s5] ss:$0 sm:$0xff] }
  0x53   :  { %990 = vmatprep.subr.bf16.mxu0 %v989_v9  ;;  %v934_v24 = vld [vmem:[%s1531_s6] ss:$0 sm:$0xff] }
  0x54   :  { %1000 = vmatpush3.bf16.msra.mxu1 %v993_v13 }
  0x55   :  { %961 = vmatmul.mubr.msk.f32.vlgmr.msra.gmra.mrb[0].mxu0 %vm107_vm1, %v95_v15 }
  0x56   :  { %992 = vmatpush3.bf16.msra.mxu0 %v989_v9  ;;  %971 = vmatprep.mubr.msk.f32.mxu0 %vm107_vm1, %v1316_v16 }
  0x57   :  { %975 = vmatmul.mubr.msk.f32.vlgmr.msra.gmra.mrb[0].mxu1 %vm107_vm1, %v1318_v17  ;;  %994 = vmatprep.subr.bf16.mxu0 %v993_v13 }
  0x58   :  { %977 = vmatprep.mubr.msk.f32.mxu1 %vm107_vm1, %v1321_v18 }
  0x5a   :  { %996 = vmatpush3.bf16.msra.mxu0 %v993_v13 }
  0x5b   :  { %978 = vmatmul.mubr.msk.f32.gmra.mrb[2].mxu1 %vm107_vm1, %v1329_v19 }
  0x5c   :  { %980 = vmatprep.mubr.msk.f32.mxu1 %vm107_vm1, %v1331_v20 }
  0x5d   :  { %972 = vmatmul.mubr.msk.f32.vlgmr.msra.gmra.mrb[2].mxu0 %vm107_vm1, %v1333_v21 }
  0x5f   :  { %981 = vmatmul.mubr.msk.f32.gmra.mrb[4].mxu1 %vm107_vm1, %v1339_v22 }
 0x128   :  { %v177_v30 = vpop.f32.mrb[0].mxu0 }
 0x129   :  { %v178_v31 = vadd.f32 %v923_v28, %v177_v30  ;;  %v962_v32 = vpop.f32.mrb[1].mxu0 }
 0x12a   :  { %v976_v33 = vpop.f32.mrb[0].mxu1 }
 0x12b   :  { %v322_v34 = vcombine.high %v178_v31, %v178_v31  ;;  %v329_v35 = vrot.slane %v178_v31, %v328_v29  ;;  %v292_v37 = vpop.f32.mrb[1].mxu1  ;;  %v298_v42 = vadd.f32 %v976_v33, %v925_v36 }
 0x12c   :  { %v293_v46 = vadd.f32 %v925_v36, %v292_v37 }
 0x12d   :  { %v336_v39 = vrot.slane %v322_v34, %v328_v29  ;;  %v337_v40 = vcombine.high %v329_v35, %v329_v35  ;;  %v345_v41 = vrot.slane %v329_v35, %v328_v29 }
 0x12e   :  { %v979_v43 = vpop.f32.mrb[2].mxu1 }
 0x12f   :  { %v338_v44 = vcombine.high %v336_v39, %v336_v39  ;;  %v359_v45 = vrot.slane %v337_v40, %v328_v29  ;;  %v367_v47 = vcombine.high %v345_v41, %v345_v41  ;;  %v302_v48 = vpop.f32.mrb[3].mxu1  ;;  %v308_v49 = vadd.f32 %v979_v43, %v925_v36 }
 0x130   :  { %v973_v50 = vpop.f32.mrb[2].mxu0  ;;  %v303_v51 = vadd.f32 %v925_v36, %v302_v48  ;;  %v352_v52 = vrot.slane %v336_v39, %v328_v29  ;;  %v374_v53 = vrot.slane %v345_v41, %v1356_v38 }
 0x131   :  { %v369_v54 = vcombine.high %v359_v45, %v359_v45  ;;  %v382_v55 = vrot.slane %v367_v47, %v1356_v38  ;;  %v366_v56 = vrot.slane %v338_v44, %v328_v29  ;;  %v288_v57 = vadd.f32 %v973_v50, %v925_v36  ;;  %v282_v58 = vpop.f32.mrb[3].mxu0 }
 0x132   :  { %v378_v59 = vrot.slane %v359_v45, %v1356_v38  ;;  %v390_v60 = vrot.slane %v352_v52, %v1356_v38  ;;  %v283_v61 = vadd.f32 %v925_v36, %v282_v58  ;;  %v982_v62 = vpop.f32.mrb[4].mxu1  ;;  %v368_v63 = vcombine.high %v352_v52, %v352_v52 }
 0x133   :  { %v386_v0 = vrot.slane %v369_v54, %v1356_v38  ;;  %v413_v1 = vadd.f32 %v382_v55, %v293_v46  ;;  %v394_v2 = vrot.slane %v366_v56, %v1356_v38  ;;  %v318_v3 = vadd.f32 %v982_v62, %v925_v36  ;;  %v312_v4 = vpop.f32.mrb[5].mxu1 }
 0x134   :  { %v412_v5 = vadd.f32 %v378_v59, %v288_v57  ;;  %v415_v6 = vadd.f32 %v390_v60, %v303_v51  ;;  %v411_v7 = vadd.f32 %v374_v53, %v283_v61  ;;  %v370_v8 = vcombine.high %v366_v56, %v366_v56 }
 0x135   :  { %v414_v9 = vadd.f32 %v386_v0, %v298_v42  ;;  %1016 = vtanh.f32 %v413_v1  ;;  %v416_v10 = vadd.f32 %v394_v2, %v308_v49  ;;  %v313_v11 = vadd.f32 %v925_v36, %v312_v4 }
 0x136   :  { %1018 = vtanh.f32 %v412_v5  ;;  %v402_v12 = vrot.slane %v370_v8, %v1356_v38  ;;  %v398_v13 = vrot.slane %v368_v63, %v1356_v38  ;;  %v485_v52 = vand.u32 127, %v326_v25 }
 0x137   :  { %1020 = vtanh.f32 %v414_v9  ;;  %v467_v54 = vstv %s1532_s7  ;;  %s1203_s7 = smov [#allocation12]  }
 0x138   :  { %1022 = vtanh.f32 %v416_v10  ;;  %v418_v15 = vadd.f32 %v402_v12, %v318_v3  ;;  %v417_v23 = vadd.f32 %v398_v13, %v313_v11  ;;  %v1382_v56 = vsub.s32 %v485_v52, %v1346_v27  ;;  %s908_s17 = sshll.u32 %s1203_s7, 4  ;;  %s909_s17 = int_to_ptr.vmem [resolvable:$true] %s908_s17 }
 0x139   :  { %1024 = vtanh.f32 %v415_v6  ;;  %v564_v52 = vsub.s32 6, %v1346_v27  ;;  %s1138_s18 = scalar_lea.vmem %s909_s17, 128  ;;  %p1143_p5 = scmp.lt.s32.totalorder %s909_s17, %s909_s17 }
 0x13a   :  { %1026 = vtanh.f32 %v411_v7  ;;  %p1139_p4 = scmp.ne.s32.totalorder %s909_s17, %s1138_s18  ;;  %p1144_p6 = scmp.lt.s32.totalorder %s1138_s18, %s1138_s18 }
 0x13b   :  { %1028 = vtanh.f32 %v418_v15 }
 0x13c   :  { %1030 = vtanh.f32 %v417_v23  ;;  %p1145_p7 = por %p1144_p6, %p1143_p5 }
 0x13e   :  { %p1146_p8 = pnand %p1145_p7, %p1139_p4 }
 0x13f   :  { %v1017_v26 = vpop.eup %1016 }
 0x140   :  { %v1019_v28 = vpop.eup %1018  ;;  %v436_v29 = vmul.f32 %v1017_v26, %v934_v24 }
 0x141   :  { %v1021_v30 = vpop.eup %1020  ;;  %v435_v31 = vmul.f32 %v1019_v28, %v934_v24 }
 0x142   :  { %v1023_v32 = vpop.eup %1022  ;;  %v448_v33 = vsel %vm107_vm1, %v436_v29, 0.0  ;;  %v437_v34 = vmul.f32 %v1021_v30, %v934_v24 }
 0x143   :  { %v1025_v35 = vpop.eup %1024  ;;  %449 = vadd.xlane.f32.xlu1 %v448_v33  ;;  %v445_v36 = vsel %vm107_vm1, %v435_v31, 0.0  ;;  %v439_v41 = vmul.f32 %v1023_v32, %v934_v24  ;;  %v1202_v32 = vmov 0   ;;  %v544_v33 = vsub.s32 1, %v1346_v27 }
 0x144   :  { %v1027_v37 = vpop.eup %1026  ;;  %446 = vadd.xlane.f32.xlu0 %v445_v36  ;;  %v451_v40 = vsel %vm107_vm1, %v437_v34, 0.0  ;;  %v438_v44 = vmul.f32 %v1025_v35, %v934_v24  ;;  %1014 = vset.pattern.permute.xlu1 %v1202_v32  ;;  %v548_v34 = vsub.s32 2, %v1346_v27  ;;  %v552_v35 = vsub.s32 3, %v1346_v27 }
 0x145   :  { %v434_v39 = vmul.f32 %v1027_v37, %v934_v24  ;;  %v1029_v42 = vpop.eup %1028  ;;  %v457_v46 = vsel %vm107_vm1, %v439_v41, 0.0  ;;  %1015 = vset.pattern.permute.xlu0 %v1202_v32  ;;  %v556_v41 = vsub.s32 4, %v1346_v27 }
 0x146   :  { %v1031_v45 = vpop.eup %1030  ;;  %v441_v47 = vmul.f32 %v1029_v42, %v934_v24  ;;  %v454_v48 = vsel %vm107_vm1, %v438_v44, 0.0 }
 0x147   :  { %452 = vadd.xlane.f32.xlu1 %v451_v40  ;;  %v442_v43 = vsel %vm107_vm1, %v434_v39, 0.0  ;;  %v440_v49 = vmul.f32 %v1031_v45, %v934_v24 }
 0x148   :  { %443 = vadd.xlane.f32.xlu0 %v442_v43  ;;  %v463_v50 = vsel %vm107_vm1, %v441_v47, 0.0 }
 0x149   :  { %v460_v51 = vsel %vm107_vm1, %v440_v49, 0.0 }
 0x14b   :  { %458 = vadd.xlane.f32.xlu1 %v457_v46 }
 0x14c   :  { %455 = vadd.xlane.f32.xlu0 %v454_v48  ;;  %v560_v48 = vsub.s32 5, %v1346_v27 }
 0x14f   :  { %464 = vadd.xlane.f32.xlu1 %v463_v50 }
 0x150   :  { %461 = vadd.xlane.f32.xlu0 %v460_v51 }
 0x1d0   :  { %v450_v53 = vpop.xlane.xlu1 %449 }
 0x1d1   :  { %v447_v55 = vpop.xlane.xlu0 %446  ;;  %v470_v59 = vadd.f32 %v467_v54, %v450_v53 }
 0x1d2   :  { %v469_v57 = vadd.f32 %v467_v54, %v447_v55 }
 0x1d3   :  { %v497_v1 = vrot.slane %v470_v59, %v1382_v56 }
 0x1d4   :  { %v453_v58 = vpop.xlane.xlu1 %452  ;;  %v493_v63 = vrot.slane %v469_v57, %v1382_v56 }
 0x1d5   :  { %v444_v60 = vpop.xlane.xlu0 %443  ;;  %v471_v61 = vadd.f32 %v467_v54, %v453_v58 }
 0x1d6   :  { %v468_v62 = vadd.f32 %v467_v54, %v444_v60 }
 0x1d7   :  { %v501_v4 = vrot.slane %v471_v61, %v1382_v56 }
 0x1d8   :  { %v489_v25 = vrot.slane %v468_v62, %v1382_v56  ;;  %v459_v0 = vpop.xlane.xlu1 %458 }
 0x1d9   :  { %v1387_v2 = vadd.f32 %v467_v54, %v459_v0  ;;  %v456_v3 = vpop.xlane.xlu0 %455 }
 0x1da   :  { %v519_v5 = vsel %vm518_vm2, %v493_v63, %v489_v25  ;;  %v472_v6 = vadd.f32 %v467_v54, %v456_v3 }
 0x1db   :  { %v521_v7 = vsel %vm520_vm3, %v497_v1, %v519_v5  ;;  %v509_v11 = vrot.slane %v1387_v2, %v1382_v56 }
 0x1dc   :  { %v523_v8 = vsel %vm522_vm4, %v501_v4, %v521_v7  ;;  %v505_v9 = vrot.slane %v472_v6, %v1382_v56  ;;  %v465_v10 = vpop.xlane.xlu1 %464 }
 0x1dd   :  { %v1396_v12 = vadd.f32 %v467_v54, %v465_v10  ;;  %v462_v13 = vpop.xlane.xlu0 %461 }
 0x1de   :  { %v525_v15 = vsel %vm524_vm5, %v505_v9, %v523_v8  ;;  %v474_v23 = vadd.f32 %v467_v54, %v462_v13 }
 0x1df   :  { %v517_v24 = vrot.slane %v1396_v12, %v1382_v56  ;;  %v527_v28 = vsel %vm526_vm6, %v509_v11, %v525_v15 }
 0x1e0   :  { %v513_v26 = vrot.slane %v474_v23, %v1382_v56 }
 0x1e2   :  { %v529_v29 = vsel %vm528_vm7, %v513_v26, %v527_v28 }
 0x1e3   :  { %v531_v30 = vsel %vm530_vm8, %v517_v24, %v529_v29 }
 0x1e4   :  { %v534_v31 = vsel %vm533_vm9, %v531_v30, -inf }
 0x1e5   :  { %535 = vmax.xlane.f32.xlu0 %v534_v31 }
 0x272   :  { %v536_v36 = vpop.xlane.xlu0 %535 }
 0x273   :  { %v541_v37 = vrot.slane %v536_v36, %v1356_v38  ;;  %v545_v39 = vrot.slane %v536_v36, %v544_v33  ;;  %v549_v40 = vrot.slane %v536_v36, %v548_v34  ;;  %v553_v42 = vrot.slane %v536_v36, %v552_v35 }
 0x274   :  { %v557_v49 = vrot.slane %v536_v36, %v556_v41  ;;  %v561_v53 = vrot.slane %v536_v36, %v560_v48  ;;  %v565_v58 = vrot.slane %v536_v36, %v564_v52 }
 0x275   :  { %v578_v43 = vsub.f32 %v468_v62, %v541_v37  ;;  %v579_v44 = vsub.f32 %v469_v57, %v545_v39  ;;  %v580_v45 = vsub.f32 %v470_v59, %v549_v40  ;;  %v581_v50 = vsub.f32 %v471_v61, %v553_v42 }
 0x276   :  { %v582_v54 = vsub.f32 %v472_v6, %v557_v49  ;;  %v568_v57 = vsub.s32 7, %v1346_v27  ;;  %v583_v59 = vsub.f32 %v1387_v2, %v561_v53  ;;  %v584_v25 = vsub.f32 %v474_v23, %v565_v58 }
 0x277   :  { %v586_v46 = vmul.f32 1.442695, %v578_v43  ;;  %v588_v47 = vmul.f32 1.442695, %v579_v44  ;;  %v590_v51 = vmul.f32 1.442695, %v580_v45 }
 0x278   :  { %v592_v55 = vmul.f32 1.442695, %v581_v50  ;;  %v594_v60 = vmul.f32 1.442695, %v582_v54  ;;  %v569_v63 = vrot.slane %v536_v36, %v568_v57  ;;  %v596_v0 = vmul.f32 1.442695, %v583_v59 }
 0x279   :  { %1032 = vpow2.f32 %v586_v46  ;;  %v598_v4 = vmul.f32 1.442695, %v584_v25 }
 0x27a   :  { %1034 = vpow2.f32 %v588_v47  ;;  %v585_v3 = vsub.f32 %v1396_v12, %v569_v63 }
 0x27b   :  { %1036 = vpow2.f32 %v590_v51 }
 0x27c   :  { %1038 = vpow2.f32 %v592_v55  ;;  %v600_v2 = vmul.f32 1.442695, %v585_v3 }
 0x27d   :  { %1040 = vpow2.f32 %v594_v60 }
 0x27e   :  { %1042 = vpow2.f32 %v596_v0 }
 0x27f   :  { %1044 = vpow2.f32 %v598_v4 }
 0x280   :  { %1046 = vpow2.f32 %v600_v2 }
 0x283   :  { %v1033_v61 = vpop.eup %1032 }
 0x284   :  { %v1035_v62 = vpop.eup %1034  ;;  %611 = vperm.xlu1 %1014, %v1033_v61  }
 0x285   :  { %614 = vperm.xlu0 %1015, %v1035_v62   ;;  %v1037_v1 = vpop.eup %1036 }
 0x286   :  { %v1039_v5 = vpop.eup %1038 }
 0x287   :  { %v1041_v6 = vpop.eup %1040 }
 0x288   :  { %617 = vperm.xlu1 %1014, %v1037_v1   ;;  %v1043_v7 = vpop.eup %1042 }
 0x289   :  { %v1045_v8 = vpop.eup %1044 }
 0x28a   :  { %v1047_v9 = vpop.eup %1046 }
 0x28c   :  { %620 = vperm.xlu1 %1014, %v1039_v5  }
 0x290   :  { %623 = vperm.xlu1 %1014, %v1041_v6  }
 0x294   :  { %626 = vperm.xlu1 %1014, %v1043_v7  }
 0x298   :  { %629 = vperm.xlu1 %1014, %v1045_v8  }
 0x29c   :  { %632 = vperm.xlu1 %1014, %v1047_v9  }
 0x303   :  { %v612_v10 = vpop.permute.xlu1 %611 }
 0x304   :  { %v615_v12 = vpop.permute.xlu0 %614  ;;  %v637_v26 = vrot.slane %v612_v10, %v1382_v56 }
 0x305   :  { %v641_v24 = vrot.slane %v615_v12, %v1382_v56 }
 0x307   :  { %v618_v11 = vpop.permute.xlu1 %617  ;;  %v666_v32 = vsel %vm518_vm2, %v641_v24, %v637_v26 }
 0x308   :  { %v645_v28 = vrot.slane %v618_v11, %v1382_v56 }
 0x30a   :  { %v667_v37 = vsel %vm520_vm3, %v645_v28, %v666_v32 }
 0x30b   :  { %v621_v13 = vpop.permute.xlu1 %620 }
 0x30c   :  { %v649_v29 = vrot.slane %v621_v13, %v1382_v56 }
 0x30e   :  { %v668_v40 = vsel %vm522_vm4, %v649_v29, %v667_v37 }
 0x30f   :  { %v624_v15 = vpop.permute.xlu1 %623 }
 0x310   :  { %v653_v30 = vrot.slane %v624_v15, %v1382_v56 }
 0x312   :  { %v669_v42 = vsel %vm524_vm5, %v653_v30, %v668_v40 }
 0x313   :  { %v627_v23 = vpop.permute.xlu1 %626 }
 0x314   :  { %v657_v36 = vrot.slane %v627_v23, %v1382_v56 }
 0x316   :  { %v670_v44 = vsel %vm526_vm6, %v657_v36, %v669_v42 }
 0x317   :  { %v630_v31 = vpop.permute.xlu1 %629 }
 0x318   :  { %v661_v39 = vrot.slane %v630_v31, %v1382_v56 }
 0x31a   :  { %v671_v46 = vsel %vm528_vm7, %v661_v39, %v670_v44 }
 0x31b   :  { %v633_v43 = vpop.permute.xlu1 %632 }
 0x31c   :  { %v665_v45 = vrot.slane %v633_v43, %v1382_v56 }
 0x31e   :  { %v672_v47 = vsel %vm530_vm8, %v665_v45, %v671_v46 }
 0x31f   :  { %v674_v49 = vsel %vm533_vm9, %v672_v47, 0.0 }
 0x320   :  { %675 = vadd.xlane.f32.xlu1 %v674_v49 }
 0x3ad   :  { %v676_v50 = vpop.xlane.xlu1 %675 }
 0x3ae   :  { %1048 = vrcp.f32 %v676_v50 }
 0x3b8   :  { %v1049_v51 = vpop.eup %1048 }
 0x3b9   :  { %v678_v53 = vmul.f32 %v1049_v51, %v676_v50 }
 0x3bb   :  { %v679_v54 = vsub.f32 2.0, %v678_v53 }
 0x3bd   :  { %v680_v55 = vmul.f32 %v1049_v51, %v679_v54 }
 0x3bf   :  { %v685_v58 = vrot.slane %v680_v55, %v1356_v38  ;;  %v689_v60 = vrot.slane %v680_v55, %v544_v33  ;;  %v693_v25 = vrot.slane %v680_v55, %v548_v34  ;;  %v697_v3 = vrot.slane %v680_v55, %v552_v35 }
 0x3c0   :  { %v701_v2 = vrot.slane %v680_v55, %v556_v41  ;;  %v705_v33 = vrot.slane %v680_v55, %v560_v48  ;;  %v709_v34 = vrot.slane %v680_v55, %v564_v52  ;;  %v713_v35 = vrot.slane %v680_v55, %v568_v57 }
 0x3c1   :  { %v722_v59 = vmul.f32 %v1033_v61, %v685_v58  ;;  %v723_v63 = vmul.f32 %v1035_v62, %v689_v60  ;;  %v724_v0 = vmul.f32 %v1037_v1, %v693_v25  ;;  %v725_v4 = vmul.f32 %v1039_v5, %v697_v3 }
 0x3c2   :  { %v726_v38 = vmul.f32 %v1041_v6, %v701_v2  ;;  %v727_v61 = vmul.f32 %v1043_v7, %v705_v33  ;;  %v728_v62 = vmul.f32 %v1045_v8, %v709_v34  ;;  %v729_v1 = vmul.f32 %v1047_v9, %v713_v35 }
 0x3c3   :  { %732 = vperm.xlu0 %1015, %v722_v59  }
 0x3c7   :  { %737 = vperm.xlu0 %1015, %v723_v63  }
 0x3cb   :  { %742 = vperm.xlu0 %1015, %v724_v0  }
 0x3cf   :  { %747 = vperm.xlu0 %1015, %v725_v4  }
 0x3d3   :  { %752 = vperm.xlu0 %1015, %v726_v38  }
 0x3d7   :  { %757 = vperm.xlu0 %1015, %v727_v61  }
 0x3db   :  { %762 = vperm.xlu0 %1015, %v728_v62  }
 0x3df   :  { %767 = vperm.xlu0 %1015, %v729_v1  }
 0x442   :  { %v733_v5 = vpop.permute.xlu0 %732 }
 0x443   :  { %v770_v10 = vmul.f32 %v733_v5, %v1316_v16  ;;  %v854_v36 = vrot.slane %v733_v5, %v1382_v56 }
 0x445   :  { %v778_v52 = vsel %vm107_vm1, %v770_v10, 0.0 }
 0x446   :  { %v738_v41 = vpop.permute.xlu0 %737  ;;  %v779_v13 = vrot.slane %v778_v52, 4 }
 0x447   :  { %v771_v6 = vmul.f32 %v738_v41, %v1333_v21  ;;  %v858_v32 = vrot.slane %v738_v41, %v1382_v56 }
 0x449   :  { %v785_v11 = vsel %vm107_vm1, %v771_v6, 0.0  ;;  %v883_v50 = vsel %vm518_vm2, %v858_v32, %v854_v36 }
 0x44a   :  { %v743_v48 = vpop.permute.xlu0 %742  ;;  %v786_v9 = vrot.slane %v785_v11, 4 }
 0x44b   :  { %v772_v7 = vmul.f32 %v743_v48, %v1312_v14  ;;  %v780_v14 = vadd.f32 %v779_v13, %v778_v52  ;;  %v862_v39 = vrot.slane %v743_v48, %v1382_v56 }
 0x44c   :  { %v787_v24 = vadd.f32 %v786_v9, %v785_v11 }
 0x44d   :  { %v792_v8 = vsel %vm107_vm1, %v772_v7, 0.0  ;;  %v781_v42 = vrot.slane %v780_v14, 2  ;;  %v884_v55 = vsel %vm520_vm3, %v862_v39, %v883_v50 }
 0x44e   :  { %v748_v27 = vpop.permute.xlu0 %747  ;;  %v793_v15 = vrot.slane %v792_v8, 4  ;;  %v788_v37 = vrot.slane %v787_v24, 2 }
 0x44f   :  { %v773_v57 = vmul.f32 %v748_v27, %v1318_v17  ;;  %v866_v43 = vrot.slane %v748_v27, %v1382_v56  ;;  %v782_v60 = vadd.f32 %v781_v42, %v780_v14 }
 0x450   :  { %v794_v26 = vadd.f32 %v793_v15, %v792_v8  ;;  %v789_v54 = vadd.f32 %v788_v37, %v787_v24 }
 0x451   :  { %v799_v12 = vsel %vm107_vm1, %v773_v57, 0.0  ;;  %v885_v25 = vsel %vm522_vm4, %v866_v43, %v884_v55  ;;  %v783_v7 = vrot.slane %v782_v60, 1 }
 0x452   :  { %v800_v21 = vrot.slane %v799_v12, 4  ;;  %v753_v23 = vpop.permute.xlu0 %752  ;;  %v790_v35 = vrot.slane %v789_v54, 1 }
 0x453   :  { %v774_v16 = vmul.f32 %v753_v23, %v1321_v18  ;;  %v795_v18 = vrot.slane %v794_v26, 2  ;;  %v870_v46 = vrot.slane %v753_v23, %v1382_v56 }
 0x454   :  { %v801_v29 = vadd.f32 %v800_v21, %v799_v12 }
 0x455   :  { %v806_v28 = vsel %vm107_vm1, %v774_v16, 0.0  ;;  %v796_v63 = vadd.f32 %v795_v18, %v794_v26  ;;  %v886_v4 = vsel %vm524_vm5, %v870_v46, %v885_v25 }
 0x456   :  { %v807_v30 = vrot.slane %v806_v28, 4  ;;  %v758_v31 = vpop.permute.xlu0 %757  ;;  %v802_v45 = vrot.slane %v801_v29, 2 }
 0x457   :  { %v775_v17 = vmul.f32 %v758_v31, %v1329_v19  ;;  %v874_v51 = vrot.slane %v758_v31, %v1382_v56  ;;  %v797_v6 = vrot.slane %v796_v63, 1 }
 0x458   :  { %v808_v40 = vadd.f32 %v807_v30, %v806_v28  ;;  %v803_v3 = vadd.f32 %v802_v45, %v801_v29 }
 0x459   :  { %v813_v44 = vsel %vm107_vm1, %v775_v17, 0.0  ;;  %v887_v61 = vsel %vm526_vm6, %v874_v51, %v886_v4 }
 0x45a   :  { %v814_v47 = vrot.slane %v813_v44, 4  ;;  %v763_v49 = vpop.permute.xlu0 %762  ;;  %v809_v19 = vrot.slane %v808_v40, 2  ;;  %v804_v11 = vrot.slane %v803_v3, 1 }
 0x45b   :  { %v776_v53 = vmul.f32 %v763_v49, %v1331_v20  ;;  %v878_v59 = vrot.slane %v763_v49, %v1382_v56 }
 0x45c   :  { %v815_v58 = vadd.f32 %v814_v47, %v813_v44  ;;  %v810_v33 = vadd.f32 %v809_v19, %v808_v40 }
 0x45d   :  { %v820_v0 = vsel %vm107_vm1, %v776_v53, 0.0  ;;  %v888_v41 = vsel %vm528_vm7, %v878_v59, %v887_v61 }
 0x45e   :  { %v816_v2 = vrot.slane %v815_v58, 2  ;;  %v821_v38 = vrot.slane %v820_v0, 4  ;;  %v768_v20 = vpop.permute.xlu0 %767 }
 0x45f   :  { %v777_v34 = vmul.f32 %v768_v20, %v1339_v22  ;;  %v882_v62 = vrot.slane %v768_v20, %v1382_v56  ;;  %v811_v22 = vrot.slane %v810_v33, 1 }
 0x460   :  { %v817_v1 = vadd.f32 %v816_v2, %v815_v58  ;;  %v822_v5 = vadd.f32 %v821_v38, %v820_v0 }
 0x461   :  { %v827_v10 = vsel %vm107_vm1, %v777_v34, 0.0  ;;  %v889_v48 = vsel %vm530_vm8, %v882_v62, %v888_v41 }
 0x462   :  { %v823_v52 = vrot.slane %v822_v5, 2  ;;  %v828_v8 = vrot.slane %v827_v10, 4  ;;  %891 = vst.msk [vmem:[#allocation12] sm:$0xff] %vm533_vm9, %v889_v48 }
 0x463   :  { %1149 = shalt.err (!%p1146_p8)
}
 0x464   :  { %s1150_s23 = scalar_lea.hbm %s1534_s9, 128 }
 0x465   :  { %p1151_p9 = scmp.ne.s32.totalorder %s1534_s9, %s1150_s23  ;;  %p1154_p10 = scmp.lt.u32.totalorder %s1150_s23, %s1534_s9 }
 0x467   :  { %p1156_p11 = pnand %p1154_p10, %p1151_p9 }
 0x469   :  { %1159 = shalt.err (!%p1156_p11)
}
 0x46a   :  { %911 = dma.vmem_to_hbm [thread:$0]  %s909_s17, 128, %s1534_s9, [#allocation13]   ;;  %v791_v56 = vadd.f32 %v790_v35, %v789_v54  ;;  %v818_v27 = vrot.slane %v817_v1, 1  ;;  %v824_v57 = vadd.f32 %v823_v52, %v822_v5  ;;  %v829_v9 = vadd.f32 %v828_v8, %v827_v10 }
 0x46b   :  { %v798_v13 = vadd.f32 %v797_v6, %v796_v63  ;;  %v784_v15 = vadd.f32 %v783_v7, %v782_v60  ;;  %v805_v12 = vadd.f32 %v804_v11, %v803_v3  ;;  %v812_v16 = vadd.f32 %v811_v22, %v810_v33  ;;  %s1204_s9 = smov [#allocation11]  }
 0x46c   :  { %v825_v21 = vrot.slane %v824_v57, 1  ;;  %v830_v23 = vrot.slane %v829_v9, 2  ;;  %v819_v14 = vadd.f32 %v818_v27, %v817_v1  ;;  %s898_s30 = sshll.u32 %s1204_s9, 4  ;;  %s899_s30 = int_to_ptr.vmem [resolvable:$true] %s898_s30 }
 0x46d   :  { %v842_v24 = vsel %vm518_vm2, %v791_v56, %v784_v15  ;;  %s1160_s11 = scalar_lea.vmem %s899_s30, 128  ;;  %p1165_p13 = scmp.lt.s32.totalorder %s899_s30, %s899_s30 }
 0x46e   :  { %v831_v26 = vadd.f32 %v830_v23, %v829_v9  ;;  %v843_v28 = vsel %vm520_vm3, %v798_v13, %v842_v24  ;;  %v826_v29 = vadd.f32 %v825_v21, %v824_v57  ;;  %p1161_p12 = scmp.ne.s32.totalorder %s899_s30, %s1160_s11  ;;  %p1166_p0 = scmp.lt.s32.totalorder %s1160_s11, %s1160_s11 }
 0x46f   :  { %v844_v31 = vsel %vm522_vm4, %v805_v12, %v843_v28 }
 0x470   :  { %v832_v30 = vrot.slane %v831_v26, 1  ;;  %v845_v32 = vsel %vm524_vm5, %v812_v16, %v844_v31  ;;  %p1167_p1 = por %p1166_p0, %p1165_p13 }
 0x471   :  { %v846_v36 = vsel %vm526_vm6, %v819_v14, %v845_v32 }
 0x472   :  { %v833_v17 = vadd.f32 %v832_v30, %v831_v26  ;;  %v847_v37 = vsel %vm528_vm7, %v826_v29, %v846_v36  ;;  %p1168_p2 = pnand %p1167_p1, %p1161_p12 }
 0x474   :  { %v848_v39 = vsel %vm530_vm8, %v833_v17, %v847_v37 }
 0x475   :  { %850 = vst.msk [vmem:[#allocation11] sm:$0xff] %vm107_vm1, %v848_v39 }
 0x476   :  { %1171 = shalt.err (!%p1168_p2)
}
 0x477   :  { %s1172_s1 = scalar_lea.hbm %s1533_s8, 128 }
 0x478   :  { %p1173_p3 = scmp.ne.s32.totalorder %s1533_s8, %s1172_s1  ;;  %p1176_p4 = scmp.lt.u32.totalorder %s1172_s1, %s1533_s8 }
 0x47a   :  { %p1178_p5 = pnand %p1176_p4, %p1173_p3 }
 0x47c   :  { %1181 = shalt.err (!%p1178_p5)
}
 0x47d   :  { %901 = dma.vmem_to_hbm [thread:$0]  %s899_s30, 128, %s1533_s8, [#allocation5]  }
 0x47e   :  { %1188 = dma.done.wait [#allocation5], 128  }
 0x47f   :  { %1189 = vsyncadd [#allocation5], 4294967168 }
 0x480   :  { %1190 = dma.done.wait [#allocation13], 128  }
 0x481   :  { %1191 = vsyncadd [#allocation13], 4294967168 }
 0x482   :  { %918 = vsyncpa [#allocation4], 1 }
 0x483   :  { %919 = vsyncpa [#allocation7], 1 }
 0x484   :  { %920 = vsyncpa [#allocation10], 1 }
 0x485   :  { %921 = vsyncpa [#allocation5], 1 }
 0x486   :  { %922 = vsyncpa [#allocation13], 1 }

// kernel: tpu_custom_call.1
= control target key start
LH: loop header
LB: loop body
LE: loop exit
PB: predicated region body
PF: predicated region fallthrough
CT: control target
= control target key end

     0   :  { %16 = vsyncpa [#allocation4], 0  ;;  %s1525_s0 = inlined_call_operand.hbm [shape: f32[8,32], index: 0, kind: input, shape index: {}]   ;;  %s1526_s1 = inlined_call_operand.hbm [shape: f32[8,8,32], index: 1, kind: input, shape index: {}]   ;;  %s1527_s2 = inlined_call_operand.hbm [shape: f32[32,32], index: 2, kind: input, shape index: {}]   ;;  %s1528_s3 = inlined_call_operand.vmem [shape: f32[1,32], index: 3, kind: input, shape index: {}]   ;;  %s1529_s4 = inlined_call_operand.hbm [shape: f32[32,32], index: 4, kind: input, shape index: {}]   ;;  %s1530_s5 = inlined_call_operand.vmem [shape: f32[1,32], index: 5, kind: input, shape index: {}]   ;;  %s1531_s6 = inlined_call_operand.vmem [shape: f32[1,32], index: 6, kind: input, shape index: {}]   ;;  %s1532_s7 = inlined_call_operand.<no memory space> [shape: f32[1,1], index: 7, kind: input, shape index: {}]   ;;  %s1533_s8 = inlined_call_operand.hbm [shape: f32[8,32], index: 8, kind: output, shape index: {0}]   ;;  %s1534_s9 = inlined_call_operand.hbm [shape: f32[8,8], index: 9, kind: output, shape index: {1}]  }
   0x1   :  { %17 = vsyncpa [#allocation7], 0 }
   0x2   :  { %18 = vsyncpa [#allocation10], 0 }
   0x3   :  { %19 = vsyncpa [#allocation5], 0 }
   0x4   :  { %20 = vsyncpa [#allocation13], 0  ;;  %s1192_s30 = smov [#allocation6]   ;;  %s1050_s13 = scalar_lea.hbm %s1526_s1, 1024 }
   0x5   :  { %s36_s10 = sshll.u32 %s1192_s30, 4  ;;  %p1051_p0 = scmp.ne.s32.totalorder %s1526_s1, %s1050_s13  ;;  %s37_s10 = int_to_ptr.vmem [resolvable:$true] %s36_s10 }
   0x6   :  { %p1054_p1 = scmp.lt.u32.totalorder %s1050_s13, %s1526_s1 }
   0x8   :  { %p1056_p2 = pnand %p1054_p1, %p1051_p0 }
   0xa   :  { %1059 = shalt.err (!%p1056_p2)
}
   0xb   :  { %s1060_s18 = scalar_lea.vmem %s37_s10, 1024  ;;  %p1065_p4 = scmp.lt.s32.totalorder %s37_s10, %s37_s10 }
   0xc   :  { %p1061_p3 = scmp.ne.s32.totalorder %s37_s10, %s1060_s18  ;;  %p1066_p5 = scmp.lt.s32.totalorder %s1060_s18, %s1060_s18 }
   0xe   :  { %p1067_p6 = por %p1066_p5, %p1065_p4 }
  0x10   :  { %p1068_p7 = pnand %p1067_p6, %p1061_p3 }
  0x12   :  { %1071 = shalt.err (!%p1068_p7)
}
  0x13   :  { %s1193_s19 = smov 128   ;;  %s1194_s20 = smov 8  }
  0x14   :  { %42 = dma.hbm_to_vmem [thread:$0]  %s1526_s1, 1024, %s37_s10, [#allocation7], %s1193_s19, %s1193_s19, %s1194_s20  }
  0x15   :  { %s1195_s23 = smov [#allocation3]   ;;  %s1196_s25 = smov [#allocation8]  }
  0x16   :  { %s27_s24 = sshll.u32 %s1195_s23, 4  ;;  %s48_s26 = sshll.u32 %s1196_s25, 4  ;;  %s28_s24 = int_to_ptr.vmem [resolvable:$true] %s27_s24  ;;  %s49_s26 = int_to_ptr.vmem [resolvable:$true] %s48_s26 }
  0x17   :  { %s1072_s29 = scalar_lea.hbm %s1525_s0, 128 }
  0x18   :  { %p1073_p8 = scmp.ne.s32.totalorder %s1525_s0, %s1072_s29  ;;  %p1076_p9 = scmp.lt.u32.totalorder %s1072_s29, %s1525_s0 }
  0x1a   :  { %p1078_p10 = pnand %p1076_p9, %p1073_p8 }
  0x1c   :  { %1081 = shalt.err (!%p1078_p10)
}
  0x1d   :  { %s1082_s1 = scalar_lea.vmem %s28_s24, 128  ;;  %p1087_p12 = scmp.lt.s32.totalorder %s28_s24, %s28_s24 }
  0x1e   :  { %p1083_p11 = scmp.ne.s32.totalorder %s28_s24, %s1082_s1  ;;  %p1088_p13 = scmp.lt.s32.totalorder %s1082_s1, %s1082_s1 }
  0x20   :  { %p1089_p0 = por %p1088_p13, %p1087_p12 }
  0x22   :  { %p1090_p1 = pnand %p1089_p0, %p1083_p11 }
  0x24   :  { %1093 = shalt.err (!%p1090_p1)
}
  0x25   :  { %30 = dma.hbm_to_vmem [thread:$0]  %s1525_s0, 128, %s28_s24, [#allocation4]  }
  0x26   :  { %s1094_s17 = scalar_lea.hbm %s1527_s2, 512 }
  0x27   :  { %p1095_p2 = scmp.ne.s32.totalorder %s1527_s2, %s1094_s17  ;;  %p1098_p3 = scmp.lt.u32.totalorder %s1094_s17, %s1527_s2 }
  0x29   :  { %p1100_p4 = pnand %p1098_p3, %p1095_p2 }
  0x2b   :  { %1103 = shalt.err (!%p1100_p4)
}
  0x2c   :  { %s1104_s25 = scalar_lea.vmem %s49_s26, 512  ;;  %p1109_p6 = scmp.lt.s32.totalorder %s49_s26, %s49_s26 }
  0x2d   :  { %p1105_p5 = scmp.ne.s32.totalorder %s49_s26, %s1104_s25  ;;  %p1110_p7 = scmp.lt.s32.totalorder %s1104_s25, %s1104_s25 }
  0x2f   :  { %p1111_p8 = por %p1110_p7, %p1109_p6 }
  0x31   :  { %p1112_p9 = pnand %p1111_p8, %p1105_p5 }
  0x33   :  { %1115 = shalt.err (!%p1112_p9)
}
  0x34   :  { %54 = dma.hbm_to_vmem [thread:$0]  %s1527_s2, 512, %s49_s26, [#allocation7], %s1193_s19, %s1193_s19, %s1194_s20  }
  0x35   :  { %s1197_s27 = smov [#allocation9]   ;;  %s1116_s11 = scalar_lea.hbm %s1529_s4, 512 }
  0x36   :  { %s62_s28 = sshll.u32 %s1197_s27, 4  ;;  %p1117_p10 = scmp.ne.s32.totalorder %s1529_s4, %s1116_s11  ;;  %s63_s28 = int_to_ptr.vmem [resolvable:$true] %s62_s28 }
  0x37   :  { %p1120_p11 = scmp.lt.u32.totalorder %s1116_s11, %s1529_s4 }
  0x39   :  { %p1122_p12 = pnand %p1120_p11, %p1117_p10 }
  0x3b   :  { %1125 = shalt.err (!%p1122_p12)
}
  0x3c   :  { %s1126_s14 = scalar_lea.vmem %s63_s28, 512  ;;  %p1131_p0 = scmp.lt.s32.totalorder %s63_s28, %s63_s28 }
  0x3d   :  { %p1127_p13 = scmp.ne.s32.totalorder %s63_s28, %s1126_s14  ;;  %p1132_p1 = scmp.lt.s32.totalorder %s1126_s14, %s1126_s14 }
  0x3f   :  { %p1133_p2 = por %p1132_p1, %p1131_p0 }
  0x41   :  { %p1134_p3 = pnand %p1133_p2, %p1127_p13 }
  0x43   :  { %1137 = shalt.err (!%p1134_p3)
}
  0x44   :  { %68 = dma.hbm_to_vmem [thread:$0]  %s1529_s4, 512, %s63_s28, [#allocation10], %s1193_s19, %s1193_s19, %s1194_s20  }
  0x45   :  { %1182 = dma.done.wait [#allocation4], 128  }
  0x46   :  { %1183 = vsyncadd [#allocation4], 4294967168 }
  0x47   :  { %1184 = dma.done.wait [#allocation7], 1536  }
  0x48   :  { %1185 = vsyncadd [#allocation7], 4294965760 }
  0x49   :  { %1186 = dma.done.wait [#allocation10], 512  }
  0x4a   :  { %1187 = vsyncadd [#allocation10], 4294966784  ;;  %v1198_v0 = vmov 0.0|0.0   ;;  %vm1199_vm0 = vmmov 0   ;;  %v1200_v1 = vmov 0.0   ;;  %v96_v2 = vld [vmem:[#allocation8] sm:$0xff]  ;;  %v326_v25 = vlaneseq }
  0x4b   :  { %983 = vmatprep.subr.bf16.mxu0 %v1198_v0  ;;  %960 = vmatprep.mubr.msk.f32.mxu0 %vm1199_vm0, %v1200_v1  ;;  %v97_v3 = vld [vmem:[#allocation8 + $0x8] sm:$0xff]  ;;  %v181_v4 = vld [vmem:[#allocation9] sm:$0xff]  ;;  %v98_v7 = vld [vmem:[#allocation8 + $0x10] sm:$0xff]  ;;  %vm107_vm1 = vcmask 261120   ;;  %v1201_v23 = vmov 1966171168  }
  0x4c   :  { %v984_v5 = vpack.c.bf16 %v97_v3, %v96_v2  ;;  %v182_v6 = vld [vmem:[#allocation9 + $0x8] sm:$0xff]  ;;  %v99_v8 = vld [vmem:[#allocation8 + $0x18] sm:$0xff]  ;;  %v183_v10 = vld [vmem:[#allocation9 + $0x10] sm:$0xff]  ;;  %v324_v24 = vunpack.c.l.s4 %v1201_v23  ;;  %v1346_v27 = vshrl.u32 %v326_v25, 7  ;;  %vm518_vm2 = vcmask 1041409  }
  0x4d   :  { %v989_v9 = vpack.c.bf16 %v182_v6, %v181_v4  ;;  %v184_v11 = vld [vmem:[#allocation9 + $0x18] sm:$0xff]  ;;  %v987_v12 = vpack.c.bf16 %v99_v8, %v98_v7  ;;  %v1312_v14 = vld [vmem:[#allocation6 + $0x10] sm:$0xff]  ;;  %v1316_v16 = vld [vmem:[#allocation6] sm:$0xff]  ;;  %vm520_vm3 = vcmask 1042434   ;;  %vm522_vm4 = vcmask 1043459  }
  0x4e   :  { %985 = vmatpush3.bf16.msra.mxu0 %v984_v5  ;;  %v993_v13 = vpack.c.bf16 %v184_v11, %v183_v10  ;;  %974 = vmatprep.mubr.msk.f32.mxu1 %vm107_vm1, %v1312_v14  ;;  %v95_v15 = vld [vmem:[#allocation3] sm:$0xff]  ;;  %v1321_v18 = vld [vmem:[#allocation6 + $0x20] sm:$0xff]  ;;  %v1329_v19 = vld [vmem:[#allocation6 + $0x28] sm:$0xff]  ;;  %v325_v26 = vunpack.c.0.s8 %v324_v24  ;;  %v1356_v38 = vsub.s32 0, %v1346_v27  ;;  %vm524_vm5 = vcmask 1044484  }
  0x4f   :  { %997 = vmatprep.subr.bf16.mxu1 %v989_v9  ;;  %986 = vmatprep.subr.bf16.mxu0 %v1198_v0  ;;  %v1318_v17 = vld [vmem:[#allocation6 + $0x18] sm:$0xff]  ;;  %v1331_v20 = vld [vmem:[#allocation6 + $0x30] sm:$0xff]  ;;  %v1333_v21 = vld [vmem:[#allocation6 + $0x8] sm:$0xff]  ;;  %vm526_vm6 = vcmask 1045509   ;;  %vm528_vm7 = vcmask 1046534   ;;  %vm530_vm8 = vcmask 1047559  }
  0x50   :  { %999 = vmatpush3.bf16.msra.mxu1 %v989_v9  ;;  %v1339_v22 = vld [vmem:[#allocation6 + $0x38] sm:$0xff]  ;;  %v328_v29 = vsub.s32 %v325_v26, %v1346_v27  ;;  %vm533_vm9 = vcmask 64512  }
  0x51   :  { %998 = vmatprep.subr.bf16.mxu1 %v993_v13  ;;  %v923_v28 = vld [vmem:[%s1528_s3] ss:$0 sm:$0xff] }
  0x52   :  { %988 = vmatpush3.bf16.msra.mxu0 %v987_v12  ;;  %v925_v36 = vld [vmem:[%s1530_s5] ss:$0 sm:$0xff] }
  0x53   :  { %990 = vmatprep.subr.bf16.mxu0 %v989_v9  ;;  %v934_v24 = vld [vmem:[%s1531_s6] ss:$0 sm:$0xff] }
  0x54   :  { %1000 = vmatpush3.bf16.msra.mxu1 %v993_v13 }
  0x55   :  { %961 = vmatmul.mubr.msk.f32.vlgmr.msra.gmra.mrb[0].mxu0 %vm107_vm1, %v95_v15 }
  0x56   :  { %992 = vmatpush3.bf16.msra.mxu0 %v989_v9  ;;  %971 = vmatprep.mubr.msk.f32.mxu0 %vm107_vm1, %v1316_v16 }
  0x57   :  { %975 = vmatmul.mubr.msk.f32.vlgmr.msra.gmra.mrb[0].mxu1 %vm107_vm1, %v1318_v17  ;;  %994 = vmatprep.subr.bf16.mxu0 %v993_v13 }
  0x58   :  { %977 = vmatprep.mubr.msk.f32.mxu1 %vm107_vm1, %v1321_v18 }
  0x5a   :  { %996 = vmatpush3.bf16.msra.mxu0 %v993_v13 }
  0x5b   :  { %978 = vmatmul.mubr.msk.f32.gmra.mrb[2].mxu1 %vm107_vm1, %v1329_v19 }
  0x5c   :  { %980 = vmatprep.mubr.msk.f32.mxu1 %vm107_vm1, %v1331_v20 }
  0x5d   :  { %972 = vmatmul.mubr.msk.f32.vlgmr.msra.gmra.mrb[2].mxu0 %vm107_vm1, %v1333_v21 }
  0x5f   :  { %981 = vmatmul.mubr.msk.f32.gmra.mrb[4].mxu1 %vm107_vm1, %v1339_v22 }
 0x128   :  { %v177_v30 = vpop.f32.mrb[0].mxu0 }
 0x129   :  { %v178_v31 = vadd.f32 %v923_v28, %v177_v30  ;;  %v962_v32 = vpop.f32.mrb[1].mxu0 }
 0x12a   :  { %v976_v33 = vpop.f32.mrb[0].mxu1 }
 0x12b   :  { %v322_v34 = vcombine.high %v178_v31, %v178_v31  ;;  %v329_v35 = vrot.slane %v178_v31, %v328_v29  ;;  %v292_v37 = vpop.f32.mrb[1].mxu1  ;;  %v298_v42 = vadd.f32 %v976_v33, %v925_v36 }
 0x12c   :  { %v293_v46 = vadd.f32 %v925_v36, %v292_v37 }
 0x12d   :  { %v336_v39 = vrot.slane %v322_v34, %v328_v29  ;;  %v337_v40 = vcombine.high %v329_v35, %v329_v35  ;;  %v345_v41 = vrot.slane %v329_v35, %v328_v29 }
 0x12e   :  { %v979_v43 = vpop.f32.mrb[2].mxu1 }
 0x12f   :  { %v338_v44 = vcombine.high %v336_v39, %v336_v39  ;;  %v359_v45 = vrot.slane %v337_v40, %v328_v29  ;;  %v367_v47 = vcombine.high %v345_v41, %v345_v41  ;;  %v302_v48 = vpop.f32.mrb[3].mxu1  ;;  %v308_v49 = vadd.f32 %v979_v43, %v925_v36 }
 0x130   :  { %v973_v50 = vpop.f32.mrb[2].mxu0  ;;  %v303_v51 = vadd.f32 %v925_v36, %v302_v48  ;;  %v352_v52 = vrot.slane %v336_v39, %v328_v29  ;;  %v374_v53 = vrot.slane %v345_v41, %v1356_v38 }
 0x131   :  { %v369_v54 = vcombine.high %v359_v45, %v359_v45  ;;  %v382_v55 = vrot.slane %v367_v47, %v1356_v38  ;;  %v366_v56 = vrot.slane %v338_v44, %v328_v29  ;;  %v288_v57 = vadd.f32 %v973_v50, %v925_v36  ;;  %v282_v58 = vpop.f32.mrb[3].mxu0 }
 0x132   :  { %v378_v59 = vrot.slane %v359_v45, %v1356_v38  ;;  %v390_v60 = vrot.slane %v352_v52, %v1356_v38  ;;  %v283_v61 = vadd.f32 %v925_v36, %v282_v58  ;;  %v982_v62 = vpop.f32.mrb[4].mxu1  ;;  %v368_v63 = vcombine.high %v352_v52, %v352_v52 }
 0x133   :  { %v386_v0 = vrot.slane %v369_v54, %v1356_v38  ;;  %v413_v1 = vadd.f32 %v382_v55, %v293_v46  ;;  %v394_v2 = vrot.slane %v366_v56, %v1356_v38  ;;  %v318_v3 = vadd.f32 %v982_v62, %v925_v36  ;;  %v312_v4 = vpop.f32.mrb[5].mxu1 }
 0x134   :  { %v412_v5 = vadd.f32 %v378_v59, %v288_v57  ;;  %v415_v6 = vadd.f32 %v390_v60, %v303_v51  ;;  %v411_v7 = vadd.f32 %v374_v53, %v283_v61  ;;  %v370_v8 = vcombine.high %v366_v56, %v366_v56 }
 0x135   :  { %v414_v9 = vadd.f32 %v386_v0, %v298_v42  ;;  %1016 = vtanh.f32 %v413_v1  ;;  %v416_v10 = vadd.f32 %v394_v2, %v308_v49  ;;  %v313_v11 = vadd.f32 %v925_v36, %v312_v4 }
 0x136   :  { %1018 = vtanh.f32 %v412_v5  ;;  %v402_v12 = vrot.slane %v370_v8, %v1356_v38  ;;  %v398_v13 = vrot.slane %v368_v63, %v1356_v38  ;;  %v485_v52 = vand.u32 127, %v326_v25 }
 0x137   :  { %1020 = vtanh.f32 %v414_v9  ;;  %v467_v54 = vstv %s1532_s7  ;;  %s1203_s7 = smov [#allocation12]  }
 0x138   :  { %1022 = vtanh.f32 %v416_v10  ;;  %v418_v15 = vadd.f32 %v402_v12, %v318_v3  ;;  %v417_v23 = vadd.f32 %v398_v13, %v313_v11  ;;  %v1382_v56 = vsub.s32 %v485_v52, %v1346_v27  ;;  %s908_s17 = sshll.u32 %s1203_s7, 4  ;;  %s909_s17 = int_to_ptr.vmem [resolvable:$true] %s908_s17 }
 0x139   :  { %1024 = vtanh.f32 %v415_v6  ;;  %v564_v52 = vsub.s32 6, %v1346_v27  ;;  %s1138_s18 = scalar_lea.vmem %s909_s17, 128  ;;  %p1143_p5 = scmp.lt.s32.totalorder %s909_s17, %s909_s17 }
 0x13a   :  { %1026 = vtanh.f32 %v411_v7  ;;  %p1139_p4 = scmp.ne.s32.totalorder %s909_s17, %s1138_s18  ;;  %p1144_p6 = scmp.lt.s32.totalorder %s1138_s18, %s1138_s18 }
 0x13b   :  { %1028 = vtanh.f32 %v418_v15 }
 0x13c   :  { %1030 = vtanh.f32 %v417_v23  ;;  %p1145_p7 = por %p1144_p6, %p1143_p5 }
 0x13e   :  { %p1146_p8 = pnand %p1145_p7, %p1139_p4 }
 0x13f   :  { %v1017_v26 = vpop.eup %1016 }
 0x140   :  { %v1019_v28 = vpop.eup %1018  ;;  %v436_v29 = vmul.f32 %v1017_v26, %v934_v24 }
 0x141   :  { %v1021_v30 = vpop.eup %1020  ;;  %v435_v31 = vmul.f32 %v1019_v28, %v934_v24 }
 0x142   :  { %v1023_v32 = vpop.eup %1022  ;;  %v448_v33 = vsel %vm107_vm1, %v436_v29, 0.0  ;;  %v437_v34 = vmul.f32 %v1021_v30, %v934_v24 }
 0x143   :  { %v1025_v35 = vpop.eup %1024  ;;  %449 = vadd.xlane.f32.xlu1 %v448_v33  ;;  %v445_v36 = vsel %vm107_vm1, %v435_v31, 0.0  ;;  %v439_v41 = vmul.f32 %v1023_v32, %v934_v24  ;;  %v1202_v32 = vmov 0   ;;  %v544_v33 = vsub.s32 1, %v1346_v27 }
 0x144   :  { %v1027_v37 = vpop.eup %1026  ;;  %446 = vadd.xlane.f32.xlu0 %v445_v36  ;;  %v451_v40 = vsel %vm107_vm1, %v437_v34, 0.0  ;;  %v438_v44 = vmul.f32 %v1025_v35, %v934_v24  ;;  %1014 = vset.pattern.permute.xlu1 %v1202_v32  ;;  %v548_v34 = vsub.s32 2, %v1346_v27  ;;  %v552_v35 = vsub.s32 3, %v1346_v27 }
 0x145   :  { %v434_v39 = vmul.f32 %v1027_v37, %v934_v24  ;;  %v1029_v42 = vpop.eup %1028  ;;  %v457_v46 = vsel %vm107_vm1, %v439_v41, 0.0  ;;  %1015 = vset.pattern.permute.xlu0 %v1202_v32  ;;  %v556_v41 = vsub.s32 4, %v1346_v27 }
 0x146   :  { %v1031_v45 = vpop.eup %1030  ;;  %v441_v47 = vmul.f32 %v1029_v42, %v934_v24  ;;  %v454_v48 = vsel %vm107_vm1, %v438_v44, 0.0 }
 0x147   :  { %452 = vadd.xlane.f32.xlu1 %v451_v40  ;;  %v442_v43 = vsel %vm107_vm1, %v434_v39, 0.0  ;;  %v440_v49 = vmul.f32 %v1031_v45, %v934_v24 }
 0x148   :  { %443 = vadd.xlane.f32.xlu0 %v442_v43  ;;  %v463_v50 = vsel %vm107_vm1, %v441_v47, 0.0 }
 0x149   :  { %v460_v51 = vsel %vm107_vm1, %v440_v49, 0.0 }
 0x14b   :  { %458 = vadd.xlane.f32.xlu1 %v457_v46 }
 0x14c   :  { %455 = vadd.xlane.f32.xlu0 %v454_v48  ;;  %v560_v48 = vsub.s32 5, %v1346_v27 }
 0x14f   :  { %464 = vadd.xlane.f32.xlu1 %v463_v50 }
 0x150   :  { %461 = vadd.xlane.f32.xlu0 %v460_v51 }
 0x1d0   :  { %v450_v53 = vpop.xlane.xlu1 %449 }
 0x1d1   :  { %v447_v55 = vpop.xlane.xlu0 %446  ;;  %v470_v59 = vadd.f32 %v467_v54, %v450_v53 }
 0x1d2   :  { %v469_v57 = vadd.f32 %v467_v54, %v447_v55 }
 0x1d3   :  { %v497_v1 = vrot.slane %v470_v59, %v1382_v56 }
 0x1d4   :  { %v453_v58 = vpop.xlane.xlu1 %452  ;;  %v493_v63 = vrot.slane %v469_v57, %v1382_v56 }
 0x1d5   :  { %v444_v60 = vpop.xlane.xlu0 %443  ;;  %v471_v61 = vadd.f32 %v467_v54, %v453_v58 }
 0x1d6   :  { %v468_v62 = vadd.f32 %v467_v54, %v444_v60 }
 0x1d7   :  { %v501_v4 = vrot.slane %v471_v61, %v1382_v56 }
 0x1d8   :  { %v489_v25 = vrot.slane %v468_v62, %v1382_v56  ;;  %v459_v0 = vpop.xlane.xlu1 %458 }
 0x1d9   :  { %v1387_v2 = vadd.f32 %v467_v54, %v459_v0  ;;  %v456_v3 = vpop.xlane.xlu0 %455 }
 0x1da   :  { %v519_v5 = vsel %vm518_vm2, %v493_v63, %v489_v25  ;;  %v472_v6 = vadd.f32 %v467_v54, %v456_v3 }
 0x1db   :  { %v521_v7 = vsel %vm520_vm3, %v497_v1, %v519_v5  ;;  %v509_v11 = vrot.slane %v1387_v2, %v1382_v56 }
 0x1dc   :  { %v523_v8 = vsel %vm522_vm4, %v501_v4, %v521_v7  ;;  %v505_v9 = vrot.slane %v472_v6, %v1382_v56  ;;  %v465_v10 = vpop.xlane.xlu1 %464 }
 0x1dd   :  { %v1396_v12 = vadd.f32 %v467_v54, %v465_v10  ;;  %v462_v13 = vpop.xlane.xlu0 %461 }
 0x1de   :  { %v525_v15 = vsel %vm524_vm5, %v505_v9, %v523_v8  ;;  %v474_v23 = vadd.f32 %v467_v54, %v462_v13 }
 0x1df   :  { %v517_v24 = vrot.slane %v1396_v12, %v1382_v56  ;;  %v527_v28 = vsel %vm526_vm6, %v509_v11, %v525_v15 }
 0x1e0   :  { %v513_v26 = vrot.slane %v474_v23, %v1382_v56 }
 0x1e2   :  { %v529_v29 = vsel %vm528_vm7, %v513_v26, %v527_v28 }
 0x1e3   :  { %v531_v30 = vsel %vm530_vm8, %v517_v24, %v529_v29 }
 0x1e4   :  { %v534_v31 = vsel %vm533_vm9, %v531_v30, -inf }
 0x1e5   :  { %535 = vmax.xlane.f32.xlu0 %v534_v31 }
 0x272   :  { %v536_v36 = vpop.xlane.xlu0 %535 }
 0x273   :  { %v541_v37 = vrot.slane %v536_v36, %v1356_v38  ;;  %v545_v39 = vrot.slane %v536_v36, %v544_v33  ;;  %v549_v40 = vrot.slane %v536_v36, %v548_v34  ;;  %v553_v42 = vrot.slane %v536_v36, %v552_v35 }
 0x274   :  { %v557_v49 = vrot.slane %v536_v36, %v556_v41  ;;  %v561_v53 = vrot.slane %v536_v36, %v560_v48  ;;  %v565_v58 = vrot.slane %v536_v36, %v564_v52 }
 0x275   :  { %v578_v43 = vsub.f32 %v468_v62, %v541_v37  ;;  %v579_v44 = vsub.f32 %v469_v57, %v545_v39  ;;  %v580_v45 = vsub.f32 %v470_v59, %v549_v40  ;;  %v581_v50 = vsub.f32 %v471_v61, %v553_v42 }
 0x276   :  { %v582_v54 = vsub.f32 %v472_v6, %v557_v49  ;;  %v568_v57 = vsub.s32 7, %v1346_v27  ;;  %v583_v59 = vsub.f32 %v1387_v2, %v561_v53  ;;  %v584_v25 = vsub.f32 %v474_v23, %v565_v58 }
 0x277   :  { %v586_v46 = vmul.f32 1.442695, %v578_v43  ;;  %v588_v47 = vmul.f32 1.442695, %v579_v44  ;;  %v590_v51 = vmul.f32 1.442695, %v580_v45 }
 0x278   :  { %v592_v55 = vmul.f32 1.442695, %v581_v50  ;;  %v594_v60 = vmul.f32 1.442695, %v582_v54  ;;  %v569_v63 = vrot.slane %v536_v36, %v568_v57  ;;  %v596_v0 = vmul.f32 1.442695, %v583_v59 }
 0x279   :  { %1032 = vpow2.f32 %v586_v46  ;;  %v598_v4 = vmul.f32 1.442695, %v584_v25 }
 0x27a   :  { %1034 = vpow2.f32 %v588_v47  ;;  %v585_v3 = vsub.f32 %v1396_v12, %v569_v63 }
 0x27b   :  { %1036 = vpow2.f32 %v590_v51 }
 0x27c   :  { %1038 = vpow2.f32 %v592_v55  ;;  %v600_v2 = vmul.f32 1.442695, %v585_v3 }
 0x27d   :  { %1040 = vpow2.f32 %v594_v60 }
 0x27e   :  { %1042 = vpow2.f32 %v596_v0 }
 0x27f   :  { %1044 = vpow2.f32 %v598_v4 }
 0x280   :  { %1046 = vpow2.f32 %v600_v2 }
 0x283   :  { %v1033_v61 = vpop.eup %1032 }
 0x284   :  { %v1035_v62 = vpop.eup %1034  ;;  %611 = vperm.xlu1 %1014, %v1033_v61  }
 0x285   :  { %614 = vperm.xlu0 %1015, %v1035_v62   ;;  %v1037_v1 = vpop.eup %1036 }
 0x286   :  { %v1039_v5 = vpop.eup %1038 }
 0x287   :  { %v1041_v6 = vpop.eup %1040 }
 0x288   :  { %617 = vperm.xlu1 %1014, %v1037_v1   ;;  %v1043_v7 = vpop.eup %1042 }
 0x289   :  { %v1045_v8 = vpop.eup %1044 }
 0x28a   :  { %v1047_v9 = vpop.eup %1046 }
 0x28c   :  { %620 = vperm.xlu1 %1014, %v1039_v5  }
 0x290   :  { %623 = vperm.xlu1 %1014, %v1041_v6  }
 0x294   :  { %626 = vperm.xlu1 %1014, %v1043_v7  }
 0x298   :  { %629 = vperm.xlu1 %1014, %v1045_v8  }
 0x29c   :  { %632 = vperm.xlu1 %1014, %v1047_v9  }
 0x303   :  { %v612_v10 = vpop.permute.xlu1 %611 }
 0x304   :  { %v615_v12 = vpop.permute.xlu0 %614  ;;  %v637_v26 = vrot.slane %v612_v10, %v1382_v56 }
 0x305   :  { %v641_v24 = vrot.slane %v615_v12, %v1382_v56 }
 0x307   :  { %v618_v11 = vpop.permute.xlu1 %617  ;;  %v666_v32 = vsel %vm518_vm2, %v641_v24, %v637_v26 }
 0x308   :  { %v645_v28 = vrot.slane %v618_v11, %v1382_v56 }
 0x30a   :  { %v667_v37 = vsel %vm520_vm3, %v645_v28, %v666_v32 }
 0x30b   :  { %v621_v13 = vpop.permute.xlu1 %620 }
 0x30c   :  { %v649_v29 = vrot.slane %v621_v13, %v1382_v56 }
 0x30e   :  { %v668_v40 = vsel %vm522_vm4, %v649_v29, %v667_v37 }
 0x30f   :  { %v624_v15 = vpop.permute.xlu1 %623 }
 0x310   :  { %v653_v30 = vrot.slane %v624_v15, %v1382_v56 }
 0x312   :  { %v669_v42 = vsel %vm524_vm5, %v653_v30, %v668_v40 }
 0x313   :  { %v627_v23 = vpop.permute.xlu1 %626 }
 0x314   :  { %v657_v36 = vrot.slane %v627_v23, %v1382_v56 }
 0x316   :  { %v670_v44 = vsel %vm526_vm6, %v657_v36, %v669_v42 }
 0x317   :  { %v630_v31 = vpop.permute.xlu1 %629 }
 0x318   :  { %v661_v39 = vrot.slane %v630_v31, %v1382_v56 }
 0x31a   :  { %v671_v46 = vsel %vm528_vm7, %v661_v39, %v670_v44 }
 0x31b   :  { %v633_v43 = vpop.permute.xlu1 %632 }
 0x31c   :  { %v665_v45 = vrot.slane %v633_v43, %v1382_v56 }
 0x31e   :  { %v672_v47 = vsel %vm530_vm8, %v665_v45, %v671_v46 }
 0x31f   :  { %v674_v49 = vsel %vm533_vm9, %v672_v47, 0.0 }
 0x320   :  { %675 = vadd.xlane.f32.xlu1 %v674_v49 }
 0x3ad   :  { %v676_v50 = vpop.xlane.xlu1 %675 }
 0x3ae   :  { %1048 = vrcp.f32 %v676_v50 }
 0x3b8   :  { %v1049_v51 = vpop.eup %1048 }
 0x3b9   :  { %v678_v53 = vmul.f32 %v1049_v51, %v676_v50 }
 0x3bb   :  { %v679_v54 = vsub.f32 2.0, %v678_v53 }
 0x3bd   :  { %v680_v55 = vmul.f32 %v1049_v51, %v679_v54 }
 0x3bf   :  { %v685_v58 = vrot.slane %v680_v55, %v1356_v38  ;;  %v689_v60 = vrot.slane %v680_v55, %v544_v33  ;;  %v693_v25 = vrot.slane %v680_v55, %v548_v34  ;;  %v697_v3 = vrot.slane %v680_v55, %v552_v35 }
 0x3c0   :  { %v701_v2 = vrot.slane %v680_v55, %v556_v41  ;;  %v705_v33 = vrot.slane %v680_v55, %v560_v48  ;;  %v709_v34 = vrot.slane %v680_v55, %v564_v52  ;;  %v713_v35 = vrot.slane %v680_v55, %v568_v57 }
 0x3c1   :  { %v722_v59 = vmul.f32 %v1033_v61, %v685_v58  ;;  %v723_v63 = vmul.f32 %v1035_v62, %v689_v60  ;;  %v724_v0 = vmul.f32 %v1037_v1, %v693_v25  ;;  %v725_v4 = vmul.f32 %v1039_v5, %v697_v3 }
 0x3c2   :  { %v726_v38 = vmul.f32 %v1041_v6, %v701_v2  ;;  %v727_v61 = vmul.f32 %v1043_v7, %v705_v33  ;;  %v728_v62 = vmul.f32 %v1045_v8, %v709_v34  ;;  %v729_v1 = vmul.f32 %v1047_v9, %v713_v35 }
 0x3c3   :  { %732 = vperm.xlu0 %1015, %v722_v59  }
 0x3c7   :  { %737 = vperm.xlu0 %1015, %v723_v63  }
 0x3cb   :  { %742 = vperm.xlu0 %1015, %v724_v0  }
 0x3cf   :  { %747 = vperm.xlu0 %1015, %v725_v4  }
 0x3d3   :  { %752 = vperm.xlu0 %1015, %v726_v38  }
 0x3d7   :  { %757 = vperm.xlu0 %1015, %v727_v61  }
 0x3db   :  { %762 = vperm.xlu0 %1015, %v728_v62  }
 0x3df   :  { %767 = vperm.xlu0 %1015, %v729_v1  }
 0x442   :  { %v733_v5 = vpop.permute.xlu0 %732 }
 0x443   :  { %v770_v10 = vmul.f32 %v733_v5, %v1316_v16  ;;  %v854_v36 = vrot.slane %v733_v5, %v1382_v56 }
 0x445   :  { %v778_v52 = vsel %vm107_vm1, %v770_v10, 0.0 }
 0x446   :  { %v738_v41 = vpop.permute.xlu0 %737  ;;  %v779_v13 = vrot.slane %v778_v52, 4 }
 0x447   :  { %v771_v6 = vmul.f32 %v738_v41, %v1333_v21  ;;  %v858_v32 = vrot.slane %v738_v41, %v1382_v56 }
 0x449   :  { %v785_v11 = vsel %vm107_vm1, %v771_v6, 0.0  ;;  %v883_v50 = vsel %vm518_vm2, %v858_v32, %v854_v36 }
 0x44a   :  { %v743_v48 = vpop.permute.xlu0 %742  ;;  %v786_v9 = vrot.slane %v785_v11, 4 }
 0x44b   :  { %v772_v7 = vmul.f32 %v743_v48, %v1312_v14  ;;  %v780_v14 = vadd.f32 %v779_v13, %v778_v52  ;;  %v862_v39 = vrot.slane %v743_v48, %v1382_v56 }
 0x44c   :  { %v787_v24 = vadd.f32 %v786_v9, %v785_v11 }
 0x44d   :  { %v792_v8 = vsel %vm107_vm1, %v772_v7, 0.0  ;;  %v781_v42 = vrot.slane %v780_v14, 2  ;;  %v884_v55 = vsel %vm520_vm3, %v862_v39, %v883_v50 }
 0x44e   :  { %v748_v27 = vpop.permute.xlu0 %747  ;;  %v793_v15 = vrot.slane %v792_v8, 4  ;;  %v788_v37 = vrot.slane %v787_v24, 2 }
 0x44f   :  { %v773_v57 = vmul.f32 %v748_v27, %v1318_v17  ;;  %v866_v43 = vrot.slane %v748_v27, %v1382_v56  ;;  %v782_v60 = vadd.f32 %v781_v42, %v780_v14 }
 0x450   :  { %v794_v26 = vadd.f32 %v793_v15, %v792_v8  ;;  %v789_v54 = vadd.f32 %v788_v37, %v787_v24 }
 0x451   :  { %v799_v12 = vsel %vm107_vm1, %v773_v57, 0.0  ;;  %v885_v25 = vsel %vm522_vm4, %v866_v43, %v884_v55  ;;  %v783_v7 = vrot.slane %v782_v60, 1 }
 0x452   :  { %v800_v21 = vrot.slane %v799_v12, 4  ;;  %v753_v23 = vpop.permute.xlu0 %752  ;;  %v790_v35 = vrot.slane %v789_v54, 1 }
 0x453   :  { %v774_v16 = vmul.f32 %v753_v23, %v1321_v18  ;;  %v795_v18 = vrot.slane %v794_v26, 2  ;;  %v870_v46 = vrot.slane %v753_v23, %v1382_v56 }
 0x454   :  { %v801_v29 = vadd.f32 %v800_v21, %v799_v12 }
 0x455   :  { %v806_v28 = vsel %vm107_vm1, %v774_v16, 0.0  ;;  %v796_v63 = vadd.f32 %v795_v18, %v794_v26  ;;  %v886_v4 = vsel %vm524_vm5, %v870_v46, %v885_v25 }
 0x456   :  { %v807_v30 = vrot.slane %v806_v28, 4  ;;  %v758_v31 = vpop.permute.xlu0 %757  ;;  %v802_v45 = vrot.slane %v801_v29, 2 }
 0x457   :  { %v775_v17 = vmul.f32 %v758_v31, %v1329_v19  ;;  %v874_v51 = vrot.slane %v758_v31, %v1382_v56  ;;  %v797_v6 = vrot.slane %v796_v63, 1 }
 0x458   :  { %v808_v40 = vadd.f32 %v807_v30, %v806_v28  ;;  %v803_v3 = vadd.f32 %v802_v45, %v801_v29 }
 0x459   :  { %v813_v44 = vsel %vm107_vm1, %v775_v17, 0.0  ;;  %v887_v61 = vsel %vm526_vm6, %v874_v51, %v886_v4 }
 0x45a   :  { %v814_v47 = vrot.slane %v813_v44, 4  ;;  %v763_v49 = vpop.permute.xlu0 %762  ;;  %v809_v19 = vrot.slane %v808_v40, 2  ;;  %v804_v11 = vrot.slane %v803_v3, 1 }
 0x45b   :  { %v776_v53 = vmul.f32 %v763_v49, %v1331_v20  ;;  %v878_v59 = vrot.slane %v763_v49, %v1382_v56 }
 0x45c   :  { %v815_v58 = vadd.f32 %v814_v47, %v813_v44  ;;  %v810_v33 = vadd.f32 %v809_v19, %v808_v40 }
 0x45d   :  { %v820_v0 = vsel %vm107_vm1, %v776_v53, 0.0  ;;  %v888_v41 = vsel %vm528_vm7, %v878_v59, %v887_v61 }
 0x45e   :  { %v816_v2 = vrot.slane %v815_v58, 2  ;;  %v821_v38 = vrot.slane %v820_v0, 4  ;;  %v768_v20 = vpop.permute.xlu0 %767 }
 0x45f   :  { %v777_v34 = vmul.f32 %v768_v20, %v1339_v22  ;;  %v882_v62 = vrot.slane %v768_v20, %v1382_v56  ;;  %v811_v22 = vrot.slane %v810_v33, 1 }
 0x460   :  { %v817_v1 = vadd.f32 %v816_v2, %v815_v58  ;;  %v822_v5 = vadd.f32 %v821_v38, %v820_v0 }
 0x461   :  { %v827_v10 = vsel %vm107_vm1, %v777_v34, 0.0  ;;  %v889_v48 = vsel %vm530_vm8, %v882_v62, %v888_v41 }
 0x462   :  { %v823_v52 = vrot.slane %v822_v5, 2  ;;  %v828_v8 = vrot.slane %v827_v10, 4  ;;  %891 = vst.msk [vmem:[#allocation12] sm:$0xff] %vm533_vm9, %v889_v48 }
 0x463   :  { %1149 = shalt.err (!%p1146_p8)
}
 0x464   :  { %s1150_s23 = scalar_lea.hbm %s1534_s9, 128 }
 0x465   :  { %p1151_p9 = scmp.ne.s32.totalorder %s1534_s9, %s1150_s23  ;;  %p1154_p10 = scmp.lt.u32.totalorder %s1150_s23, %s1534_s9 }
 0x467   :  { %p1156_p11 = pnand %p1154_p10, %p1151_p9 }
 0x469   :  { %1159 = shalt.err (!%p1156_p11)
}
 0x46a   :  { %911 = dma.vmem_to_hbm [thread:$0]  %s909_s17, 128, %s1534_s9, [#allocation13]   ;;  %v791_v56 = vadd.f32 %v790_v35, %v789_v54  ;;  %v818_v27 = vrot.slane %v817_v1, 1  ;;  %v824_v57 = vadd.f32 %v823_v52, %v822_v5  ;;  %v829_v9 = vadd.f32 %v828_v8, %v827_v10 }
 0x46b   :  { %v798_v13 = vadd.f32 %v797_v6, %v796_v63  ;;  %v784_v15 = vadd.f32 %v783_v7, %v782_v60  ;;  %v805_v12 = vadd.f32 %v804_v11, %v803_v3  ;;  %v812_v16 = vadd.f32 %v811_v22, %v810_v33  ;;  %s1204_s9 = smov [#allocation11]  }
 0x46c   :  { %v825_v21 = vrot.slane %v824_v57, 1  ;;  %v830_v23 = vrot.slane %v829_v9, 2  ;;  %v819_v14 = vadd.f32 %v818_v27, %v817_v1  ;;  %s898_s30 = sshll.u32 %s1204_s9, 4  ;;  %s899_s30 = int_to_ptr.vmem [resolvable:$true] %s898_s30 }
 0x46d   :  { %v842_v24 = vsel %vm518_vm2, %v791_v56, %v784_v15  ;;  %s1160_s11 = scalar_lea.vmem %s899_s30, 128  ;;  %p1165_p13 = scmp.lt.s32.totalorder %s899_s30, %s899_s30 }
 0x46e   :  { %v831_v26 = vadd.f32 %v830_v23, %v829_v9  ;;  %v843_v28 = vsel %vm520_vm3, %v798_v13, %v842_v24  ;;  %v826_v29 = vadd.f32 %v825_v21, %v824_v57  ;;  %p1161_p12 = scmp.ne.s32.totalorder %s899_s30, %s1160_s11  ;;  %p1166_p0 = scmp.lt.s32.totalorder %s1160_s11, %s1160_s11 }
 0x46f   :  { %v844_v31 = vsel %vm522_vm4, %v805_v12, %v843_v28 }
 0x470   :  { %v832_v30 = vrot.slane %v831_v26, 1  ;;  %v845_v32 = vsel %vm524_vm5, %v812_v16, %v844_v31  ;;  %p1167_p1 = por %p1166_p0, %p1165_p13 }
 0x471   :  { %v846_v36 = vsel %vm526_vm6, %v819_v14, %v845_v32 }
 0x472   :  { %v833_v17 = vadd.f32 %v832_v30, %v831_v26  ;;  %v847_v37 = vsel %vm528_vm7, %v826_v29, %v846_v36  ;;  %p1168_p2 = pnand %p1167_p1, %p1161_p12 }
 0x474   :  { %v848_v39 = vsel %vm530_vm8, %v833_v17, %v847_v37 }
 0x475   :  { %850 = vst.msk [vmem:[#allocation11] sm:$0xff] %vm107_vm1, %v848_v39 }
 0x476   :  { %1171 = shalt.err (!%p1168_p2)
}
 0x477   :  { %s1172_s1 = scalar_lea.hbm %s1533_s8, 128 }
 0x478   :  { %p1173_p3 = scmp.ne.s32.totalorder %s1533_s8, %s1172_s1  ;;  %p1176_p4 = scmp.lt.u32.totalorder %s1172_s1, %s1533_s8 }
 0x47a   :  { %p1178_p5 = pnand %p1176_p4, %p1173_p3 }
 0x47c   :  { %1181 = shalt.err (!%p1178_p5)
}
 0x47d   :  { %901 = dma.vmem_to_hbm [thread:$0]  %s899_s30, 128, %s1533_s8, [#allocation5]  }
 0x47e   :  { %1188 = dma.done.wait [#allocation5], 128  }
 0x47f   :  { %1189 = vsyncadd [#allocation5], 4294967168 }
 0x480   :  { %1190 = dma.done.wait [#allocation13], 128  }
 0x481   :  { %1191 = vsyncadd [#allocation13], 4294967168 }
 0x482   :  { %918 = vsyncpa [#allocation4], 1 }
 0x483   :  { %919 = vsyncpa [#allocation7], 1 }
 0x484   :  { %920 = vsyncpa [#allocation10], 1 }
 0x485   :  { %921 = vsyncpa [#allocation5], 1 }
 0x486   :  { %922 = vsyncpa [#allocation13], 1 }

</bundles_post_ra>
